<compile_context>
chip_gen: v6e
topology: v6e:2x2x1
jax: 0.10.0
libtpu: 0.0.40
codegen_flags: <defaults>
</compile_context>

<pallas_src>
import math
from functools import partial

import numpy as np

import jax
import jax.numpy as jnp
from jax import lax
from jax.experimental import pallas as pl
from jax.experimental.pallas import tpu as pltpu


# ----------------------------------------------------------------------------
# kernels
# ----------------------------------------------------------------------------
def _ln_packed_kernel(x_ref, a_ref, w_ref, o_ref, *, eps, inv_c):
    # x_ref: (TR, L) in the original dtype -- G original rows of width C packed
    #        lane-dense per packed row.
    # a_ref: (L, L) f32 block-diagonal matrix of exact 1.0 (CxC blocks).
    # w_ref: (1, L) f32 -- weight tiled across the G segments.
    x = x_ref[...].astype(jnp.float32)
    a = a_ref[...]
    # Both dots depend only on x -> back-to-back MXU issue.  precision=DEFAULT
    # is a deliberate single-pass bf16 MXU choice (hidden under HBM DMA); the
    # 1.0 entries of `a` are exact in bf16.
    s1 = jnp.dot(x, a, preferred_element_type=jnp.float32,
                 precision=lax.Precision.DEFAULT)
    s2 = jnp.dot(x * x, a, preferred_element_type=jnp.float32,
                 precision=lax.Precision.DEFAULT)
    mu = s1 * inv_c
    var = jnp.maximum(s2 * inv_c - mu * mu, 0.0)
    # BiasFree: scale x itself (no mean subtraction); rsqrt rides the EUP slot.
    y = x * lax.rsqrt(var + eps) * w_ref[...]
    o_ref[...] = y.astype(o_ref.dtype)


def _ln_rows_kernel(x_ref, w_ref, o_ref, *, eps, inv_c):
    # Natural (rows, C) layout; used when C is a multiple of 128 (already
    # lane-dense) or when lane-packing is not applicable.
    x = x_ref[...].astype(jnp.float32)
    # Two independent row reductions -> the cross-lane XLU ops can interleave.
    s1 = jnp.sum(x, axis=-1, keepdims=True)
    s2 = jnp.sum(x * x, axis=-1, keepdims=True)
    mu = s1 * inv_c
    var = jnp.maximum(s2 * inv_c - mu * mu, 0.0)
    y = x * lax.rsqrt(var + eps) * w_ref[...]
    o_ref[...] = y.astype(o_ref.dtype)


# ----------------------------------------------------------------------------
# wrapper
# ----------------------------------------------------------------------------
def _round_up(n, m):
    return ((n + m - 1) // m) * m


def _segment_ones_matrix(c, g):
    # (L, L) block-diagonal with CxC blocks of exact 1.0 -> per-segment sums
    # broadcast back to every lane of their segment via one MXU matmul.
    l = g * c
    a = np.zeros((l, l), np.float32)
    for s in range(g):
        a[s * c:(s + 1) * c, s * c:(s + 1) * c] = 1.0
    return jnp.asarray(a)


def init_bias_free_layernorm(normalized_shape):
    # Mirrors the PyTorch module's parameter init (weight = ones, no bias).
    if isinstance(normalized_shape, int):
        normalized_shape = (normalized_shape,)
    assert len(normalized_shape) == 1
    return {"weight": jnp.ones(normalized_shape, jnp.float32)}


# Row tiles target ~2 MiB of f32-equivalent data per block (>=1 MiB HBM DMAs
# even for bf16 I/O): the measured ~85%-of-HBM-roofline plateau.
_TARGET_BLOCK_ELEMS = (2 * 1024 * 1024) // 4
# Row-tile alignment of 32 covers sublane packing for f32 / bf16 / f16 / int8.
_ROW_ALIGN = 32
# Explicit scoped-VMEM budget: 2x(in+out) blocks + f32 temporaries + A, with
# headroom.  Above v5e's 16 MiB / v6e's 32 MiB defaults, below v7x's 64 MiB
# physical VMEM.
_VMEM_LIMIT = 48 * 1024 * 1024


def bias_free_layernorm(x, weight, *, eps=1e-5):
    """BiasFree LayerNorm over the last dim. x: (..., C); weight: (C,)."""
    orig_shape = x.shape
    dtype = x.dtype
    C = int(orig_shape[-1])
    N = 1
    for d in orig_shape[:-1]:
        N *= int(d)

    x2 = jnp.reshape(x, (N, C))                       # contiguous -> free reshape
    wf = jnp.reshape(weight, (C,)).astype(jnp.float32)

    G = math.lcm(C, 128) // C                         # rows packed per lane-dense row
    L = G * C
    # Pack whenever the natural layout would need masked (partial-lane) HBM
    # accesses and the packed width keeps the averaging matmul hidden under
    # DMA on all generations (incl. v5e).
    use_packed = (C % 128 != 0) and (L <= 512) and (N > 0) and (N % G == 0)

    if use_packed:
        rows, lane = N // G, L
        xk = jnp.reshape(x2, (rows, L))               # contiguous -> free reshape
        operands = (xk, _segment_ones_matrix(C, G), jnp.tile(wf, G).reshape(1, L))
        kernel = partial(_ln_packed_kernel, eps=float(eps), inv_c=1.0 / C)
    else:
        rows, lane = N, C
        xk = x2
        operands = (xk, wf.reshape(1, C))
        kernel = partial(_ln_rows_kernel, eps=float(eps), inv_c=1.0 / C)

    # --- row tile selection --------------------------------------------------
    tr = max(_ROW_ALIGN, (_TARGET_BLOCK_ELEMS // lane) // _ROW_ALIGN * _ROW_ALIGN)
    tr = min(tr, _round_up(rows, _ROW_ALIGN))         # never allocate past the data
    if rows > _ROW_ALIGN and pl.cdiv(rows, tr) < 2:
        # Guarantee >=2 grid steps so the "parallel" row axis can be sharded
        # across both TensorCores on v7x.
        tr = max(_ROW_ALIGN, _round_up(pl.cdiv(rows, 2), _ROW_ALIGN))
    grid = (pl.cdiv(rows, tr),)                       # ragged tail -> partial boundary block

    if use_packed:
        in_specs = [pl.BlockSpec((tr, L), lambda i: (i, 0)),
                    pl.BlockSpec((L, L), lambda i: (0, 0)),
                    pl.BlockSpec((1, L), lambda i: (0, 0))]
    else:
        in_specs = [pl.BlockSpec((tr, lane), lambda i: (i, 0)),
                    pl.BlockSpec((1, lane), lambda i: (0, 0))]

    y = pl.pallas_call(
        kernel,
        grid=grid,
        in_specs=in_specs,
        out_specs=pl.BlockSpec((tr, lane), lambda i: (i, 0)),
        out_shape=jax.ShapeDtypeStruct((rows, lane), dtype),   # keep original dtype
        compiler_params=pltpu.CompilerParams(
            dimension_semantics=("parallel",),
            vmem_limit_bytes=_VMEM_LIMIT),
    )(*operands)

    return jnp.reshape(y, orig_shape)                 # contiguous -> free reshape


# ----------------------------------------------------------------------------
if __name__ == "__main__":
    key = jax.random.PRNGKey(0)

    def reference(x, w, eps=1e-5):
        # matches torch: var(-1, unbiased=False); x / sqrt(var + eps) * weight
        xf = x.astype(jnp.float32)
        mu = jnp.mean(xf, axis=-1, keepdims=True)
        var = jnp.mean(jnp.square(xf - mu), axis=-1, keepdims=True)
        return xf / jnp.sqrt(var + eps) * w

    fwd = jax.jit(bias_free_layernorm)

    cases = [
        ((2, 16 * 16, 48), jnp.float32, 1e-2),   # DIRformer (B, H*W, C): packed, L=384
        ((2, 8 * 8, 256), jnp.float32, 1e-2),    # C multiple of 128: rows path
        ((3, 100, 48), jnp.float32, 1e-2),       # N % G != 0: rows fallback + ragged grid
        ((2, 16 * 16, 64), jnp.bfloat16, 8e-2),  # bf16 I/O: packed, L=128
    ]
    for shape, dt, tol in cases:
        key, kx, kw = jax.random.split(key, 3)
        x = jax.random.normal(kx, shape, dtype=jnp.float32).astype(dt)
        # Module initializes weight to ones; use a non-trivial weight so the
        # scale path is actually exercised by the check.
        w = 1.0 + 0.1 * jax.random.normal(kw, (shape[-1],), dtype=jnp.float32)

        out = fwd(x, w)
        jax.block_until_ready(out)

        ref = reference(x, w)
        assert out.shape == x.shape and out.dtype == dt
        out_f32 = out.astype(jnp.float32)
        assert bool(jnp.all(jnp.isfinite(out_f32)))
        max_err = float(jnp.max(jnp.abs(out_f32 - ref)))
        assert max_err < tol, f"shape={shape} dtype={dt} max abs err {max_err}"

    print("KERNEL_OK")
</pallas_src>

<mosaic_0001>
module attributes {stable_mosaic.version = 11 : i64} {
  func.func @_ln_packed_kernel(%arg0: i32, %arg1: memref<32x384xf32, #tpu.memory_space<vmem>>, %arg2: memref<384x384xf32, #tpu.memory_space<vmem>>, %arg3: memref<1x384xf32, #tpu.memory_space<vmem>>, %arg4: memref<32x384xf32, #tpu.memory_space<vmem>>) attributes {dimension_semantics = [#tpu.dimension_semantics<parallel>], iteration_bounds = array<i64: 2>, scalar_prefetch = 0 : i64, scratch_operands = 0 : i64, tpu.core_type = #tpu.core_type<tc>, window_params = [{transform_indices = @transform_0, window_bounds = array<i64: 32, 384>}, {pipeline_mode = #tpu.pipeline_mode<synchronous>, transform_indices = @transform_1, window_bounds = array<i64: 384, 384>}, {pipeline_mode = #tpu.pipeline_mode<synchronous>, transform_indices = @transform_2, window_bounds = array<i64: 1, 384>}, {transform_indices = @transform_3, window_bounds = array<i64: 32, 384>}]} {
    %c0 = arith.constant 0 : index
    %c0_0 = arith.constant 0 : index
    %0 = vector.load %arg1[%c0, %c0_0] : memref<32x384xf32, #tpu.memory_space<vmem>>, vector<32x384xf32>
    %c0_1 = arith.constant 0 : index
    %c0_2 = arith.constant 0 : index
    %1 = vector.load %arg2[%c0_1, %c0_2] : memref<384x384xf32, #tpu.memory_space<vmem>>, vector<384x384xf32>
    %cst = arith.constant dense<0.000000e+00> : vector<32x384xf32>
    %2 = tpu.matmul %0, %1, %cst {dimension_numbers = #tpu.dot_dimension_numbers<[1], [0], [0], [1], [0, 0, 1, 1], [], []>} : vector<32x384xf32>, vector<384x384xf32>, vector<32x384xf32> -> vector<32x384xf32>
    %3 = arith.mulf %0, %0 : vector<32x384xf32>
    %cst_3 = arith.constant dense<0.000000e+00> : vector<32x384xf32>
    %4 = tpu.matmul %3, %1, %cst_3 {dimension_numbers = #tpu.dot_dimension_numbers<[1], [0], [0], [1], [0, 0, 1, 1], [], []>} : vector<32x384xf32>, vector<384x384xf32>, vector<32x384xf32> -> vector<32x384xf32>
    %cst_4 = arith.constant 0.020833334 : f32
    %5 = vector.broadcast %cst_4 : f32 to vector<32x384xf32>
    %6 = arith.mulf %2, %5 : vector<32x384xf32>
    %cst_5 = arith.constant 0.020833334 : f32
    %7 = vector.broadcast %cst_5 : f32 to vector<32x384xf32>
    %8 = arith.mulf %4, %7 : vector<32x384xf32>
    %9 = arith.mulf %6, %6 : vector<32x384xf32>
    %10 = arith.subf %8, %9 : vector<32x384xf32>
    %cst_6 = arith.constant 0.000000e+00 : f32
    %11 = vector.broadcast %cst_6 : f32 to vector<32x384xf32>
    %12 = arith.maximumf %10, %11 : vector<32x384xf32>
    %cst_7 = arith.constant 9.99999974E-6 : f32
    %13 = vector.broadcast %cst_7 : f32 to vector<32x384xf32>
    %14 = arith.addf %12, %13 : vector<32x384xf32>
    %15 = math.rsqrt %14 : vector<32x384xf32>
    %16 = arith.mulf %0, %15 : vector<32x384xf32>
    %c0_8 = arith.constant 0 : index
    %c0_9 = arith.constant 0 : index
    %17 = vector.load %arg3[%c0_8, %c0_9] : memref<1x384xf32, #tpu.memory_space<vmem>>, vector<1x384xf32>
    %18 = vector.broadcast %17 : vector<1x384xf32> to vector<32x384xf32>
    %19 = arith.mulf %16, %18 : vector<32x384xf32>
    %c0_10 = arith.constant 0 : index
    %c0_11 = arith.constant 0 : index
    %20 = vector.load %arg4[%c0_10, %c0_11] : memref<32x384xf32, #tpu.memory_space<vmem>>, vector<32x384xf32>
    tpu.vector_store %arg4[%c0_10, %c0_11], %19 {strides = array<i32>} : memref<32x384xf32, #tpu.memory_space<vmem>>, vector<32x384xf32>,
    return
  }
  func.func @transform_0(%arg0: i32) -> (i32, i32) {
    %c0_i32 = arith.constant 0 : i32
    %c0_i32_0 = arith.constant 0 : i32
    return %arg0, %c0_i32 : i32, i32
  }
  func.func @transform_1(%arg0: i32) -> (i32, i32) {
    %c0_i32 = arith.constant 0 : i32
    %c0_i32_0 = arith.constant 0 : i32
    %c0_i32_1 = arith.constant 0 : i32
    return %c0_i32, %c0_i32_0 : i32, i32
  }
  func.func @transform_2(%arg0: i32) -> (i32, i32) {
    %c0_i32 = arith.constant 0 : i32
    %c0_i32_0 = arith.constant 0 : i32
    %c0_i32_1 = arith.constant 0 : i32
    return %c0_i32, %c0_i32_0 : i32, i32
  }
  func.func @transform_3(%arg0: i32) -> (i32, i32) {
    %c0_i32 = arith.constant 0 : i32
    %c0_i32_0 = arith.constant 0 : i32
    return %arg0, %c0_i32 : i32, i32
  }
}

</mosaic_0001>

<bundles_post_ra>
// kernel: tile.9
= control target key start
LH: loop header
LB: loop body
LE: loop exit
PB: predicated region body
PF: predicated region fallthrough
CT: control target
= control target key end

     0   :  { %vm9_vm0 = vcmask 130048   ;;  %vm13_vm1 = vcmask 261120   ;;  %s106_s14 = smov 112   ;;  %s107_s15 = smov 80   ;;  %vm3_vm2 = vcmask 392192   ;;  %vm16_vm3 = vcmask 1048448   ;;  %s166_s0 = inlined_call_operand.vmem [shape: f32[8,48], index: 0, kind: input, shape index: {}]   ;;  %s167_s1 = inlined_call_operand.vmem [shape: f32[1,384], index: 1, kind: output, shape index: {}]  }
   0x1   :  { %v88_v0 = vld [vmem:[%s166_s0 + $0x5] sm:$0x1]   ;;  %v92_v3 = vld [vmem:[%s166_s0 + $0x7] sm:$0x1]   ;;  %v90_v4 = vld [vmem:[%s166_s0 + $0x2] sm:$0x1]  }
   0x2   :  { %v89_v1 = vld [vmem:[%s166_s0 + $0x5] sm:$0x1]   ;;  %34 = vrot.lane.b32.xlu1 %v92_v3, %s107_s15  ;;  %v91_v5 = vld [vmem:[%s166_s0 + $0x2] sm:$0x1]   ;;  %v93_v7 = vld [vmem:[%s166_s0 + $0x4] sm:$0x1]  }
   0x3   :  { %v10_v2 = vsel %vm9_vm0, %v89_v1, %v88_v0  ;;  %v24_v6 = vsel %vm13_vm1, %v91_v5, %v90_v4  ;;  %v2_v8 = vld [vmem:[%s166_s0] sm:$0x1]   ;;  %s108_s22 = smov 96   ;;  %s109_s23 = smov 64   ;;  %v94_v9 = vld [vmem:[%s166_s0 + $0x1] sm:$0x1]  }
   0x4   :  { %11 = vrot.lane.b32.xlu0 %v10_v2, %s106_s14  ;;  %4 = vst.msk [vmem:[#allocation0] sm:$0x1] %vm3_vm2, %v2_v8   ;;  %v95_v10 = vld [vmem:[%s166_s0 + $0x6] sm:$0x1]   ;;  %s110_s28 = smov 48   ;;  %s111_s29 = smov 32  }
   0x5   :  { %v96_v11 = vld [vmem:[%s166_s0 + $0x3] sm:$0x1]   ;;  %s112_s0 = smov 16   ;;  %vm36_vm4 = vcmask 1048192   ;;  %vm30_vm5 = vcmask 1048320   ;;  %vm43_vm6 = vcmask 916992  }
   0x6   :  { %41 = vrot.lane.b32.xlu1 %v93_v7, %s109_s23  ;;  %vm50_vm7 = vcmask 785792   ;;  %vm56_vm8 = vcmask 654592   ;;  %vm63_vm9 = vcmask 523392  }
   0x8   :  { %25 = vrot.lane.b32.xlu0 %v24_v6, %s108_s22 }
   0xa   :  { %54 = vrot.lane.b32.xlu1 %v95_v10, %s111_s29 }
   0xc   :  { %48 = vrot.lane.b32.xlu0 %v94_v9, %s110_s28 }
  0x10   :  { %61 = vrot.lane.b32.xlu0 %v96_v11, %s112_s0 }
  0x74   :  { %v35_v13 = vpop.permute.xlu1 %34  }
  0x76   :  { %v12_v12 = vpop.permute.xlu0 %11  }
  0x77   :  { %15 = vst.msk [vmem:[#allocation0 + $0x10] sm:$0x1] %vm13_vm1, %v12_v12  }
  0x78   :  { %18 = vst.msk [vmem:[#allocation0 + $0x8] sm:$0x1] %vm16_vm3, %v12_v12   ;;  %v42_v15 = vpop.permute.xlu1 %41  }
  0x79   :  { %38 = vst.msk [vmem:[#allocation0 + $0x10] sm:$0x1] %vm36_vm4, %v35_v13  }
  0x7a   :  { %v26_v14 = vpop.permute.xlu0 %25  }
  0x7b   :  { %29 = vst.msk [vmem:[#allocation0 + $0x8] sm:$0x1] %vm9_vm0, %v26_v14  }
  0x7c   :  { %31 = vst.msk [vmem:[#allocation0] sm:$0x1] %vm30_vm5, %v26_v14   ;;  %v55_v17 = vpop.permute.xlu1 %54  }
  0x7d   :  { %45 = vst.msk [vmem:[#allocation0 + $0x8] sm:$0x1] %vm43_vm6, %v42_v15  }
  0x7e   :  { %v49_v16 = vpop.permute.xlu0 %48   ;;  %58 = vst.msk [vmem:[#allocation0 + $0x10] sm:$0x1] %vm56_vm8, %v55_v17  }
  0x7f   :  { %51 = vst.msk [vmem:[#allocation0] sm:$0x1] %vm50_vm7, %v49_v16  }
  0x82   :  { %v62_v18 = vpop.permute.xlu0 %61  }
  0x83   :  { %65 = vst.msk [vmem:[#allocation0 + $0x8] sm:$0x1] %vm63_vm9, %v62_v18  }
  0x85   :  { %v81_v20 = vld [vmem:[#allocation0 + $0x10] sm:$0x1] }
  0x86   :  { %v70_v19 = vld [vmem:[#allocation0] sm:$0x1]  ;;  %98 = vst [vmem:[%s167_s1 + $0x2] sm:$0x1] %v81_v20 }
  0x87   :  { %73 = vst [vmem:[%s167_s1] sm:$0x1] %v70_v19 }
  0x8a   :  { %v75_v21 = vld [vmem:[#allocation0 + $0x8] sm:$0x1] }
  0x8b   :  { %97 = vst [vmem:[%s167_s1 + $0x1] sm:$0x1] %v75_v21 }

// kernel: tile.8
= control target key start
LH: loop header
LB: loop body
LE: loop exit
PB: predicated region body
PF: predicated region fallthrough
CT: control target
= control target key end

     0   :  { %s22_s0 = inlined_call_operand.vmem [shape: f32[48], index: 0, kind: input, shape index: {}]   ;;  %s23_s1 = inlined_call_operand.vmem [shape: f32[8,48], index: 1, kind: output, shape index: {}]  }
   0x1   :  { %v4_v0 = vld [vmem:[%s22_s0] ss:$0 sm:$0xff] }
   0x2   :  { %5 = vst [vmem:[%s23_s1] sm:$0xff] %v4_v0 }

// kernel: bias_free_layernorm.1
= control target key start
LH: loop header
LB: loop body
LE: loop exit
PB: predicated region body
PF: predicated region fallthrough
CT: control target
= control target key end

     0   :  { %s1520_s12 = smov 0   ;;  %s2804_s0 = inlined_call_operand.vmem [shape: f32[64,384], index: 0, kind: input, shape index: {}]   ;;  %s2805_s1 = inlined_call_operand.vmem [shape: f32[384,384], index: 1, kind: input, shape index: {}]   ;;  %s2806_s2 = inlined_call_operand.vmem [shape: f32[1,384], index: 2, kind: input, shape index: {}]   ;;  %s2807_s3 = inlined_call_operand.vmem [shape: f32[64,384], index: 3, kind: output, shape index: {}]  }
   0x1 LB: > { %s1238_s13 = sadd.s32 4294967295, %s1497_s12   ;;  %p1242_p0 = scmp.ge.s32.totalorder %s1497_s12, 1  ;;  %s1497_s12 = sphi %s1520_s12, %s13_s12  }
   0x2   : > { %p139_p1 = scmp.lt.s32.totalorder %s1497_s12, 3 }
   0x4   : > { %p140_p2 = pnand %p1242_p0, %p139_p1 }
   0x6   : > { %143 = sbr.rel (%p140_p2) target bundleno = 432 (0x1b0), region = 32 }
   0xb   : > { %v1531_v0 = vld [vmem:[%s2805_s1 + $0x170] sm:$0xff]  ;;  %v1541_v2 = vld [vmem:[%s2805_s1 + $0x168] sm:$0xff]  ;;  %v1553_v4 = vld [vmem:[%s2805_s1 + $0x158] sm:$0xff]  ;;  %s1728_s5 = sshll.u32 %s1238_s13, 2 }
   0xc   : > { %v1536_v1 = vld [vmem:[%s2805_s1 + $0x470] sm:$0xff]  ;;  %335 = vmatprep.subr.mxu0 %v1531_v0  ;;  %v1548_v3 = vld [vmem:[%s2805_s1 + $0x468] sm:$0xff]  ;;  %v1558_v5 = vld [vmem:[%s2805_s1 + $0x458] sm:$0xff]  ;;  %p166_p3 = scmp.lt.s32.totalorder %s1728_s5, 7 }
   0xd   : > { %424 = vmatprep.subr.mxu1 %v1536_v1  ;;  %336 = vmatpush1.msra.mxu0 %v1541_v2  ;;  %v1565_v6 = vld [vmem:[%s2805_s1 + $0x150] sm:$0xff]  ;;  %v1575_v8 = vld [vmem:[%s2805_s1 + $0x140] sm:$0xff]  ;;  %v1587_v10 = vld [vmem:[%s2805_s1 + $0x138] sm:$0xff] }
   0xe   : > { %425 = vmatpush1.msra.mxu1 %v1548_v3  ;;  %v1570_v7 = vld [vmem:[%s2805_s1 + $0x450] sm:$0xff]  ;;  %337 = vmatprep.subr.mxu0 %v1553_v4  ;;  %v1582_v9 = vld [vmem:[%s2805_s1 + $0x440] sm:$0xff]  ;;  %v1592_v11 = vld [vmem:[%s2805_s1 + $0x438] sm:$0xff]  ;;  %s3041_s5 = smov (!%p166_p3, %s1728_s5), 7 }
   0xf   : > { %426 = vmatprep.subr.mxu1 %v1558_v5  ;;  %338 = vmatpush1.msra.mxu0 %v1565_v6  ;;  %v1599_v12 = vld [vmem:[%s2805_s1 + $0x128] sm:$0xff]  ;;  %v1611_v14 = vld [vmem:[%s2805_s1 + $0x120] sm:$0xff]  ;;  %v1623_v16 = vld [vmem:[%s2805_s1 + $0x110] sm:$0xff]  ;;  %s1453_s26 = smul.u32 24, %s3041_s5 }
  0x10   : > { %427 = vmatpush1.msra.mxu1 %v1570_v7  ;;  %v1604_v13 = vld [vmem:[%s2805_s1 + $0x428] sm:$0xff]  ;;  %339 = vmatprep.subr.mxu0 %v1575_v8  ;;  %v1616_v15 = vld [vmem:[%s2805_s1 + $0x420] sm:$0xff]  ;;  %v1628_v17 = vld [vmem:[%s2805_s1 + $0x410] sm:$0xff] }
  0x11   : > { %428 = vmatprep.subr.mxu1 %v1582_v9  ;;  %340 = vmatpush1.msra.mxu0 %v1587_v10  ;;  %v1635_v18 = vld [vmem:[%s2805_s1 + $0x108] sm:$0xff]  ;;  %v1647_v20 = vld [vmem:[%s2805_s1 + $0xf8] sm:$0xff]  ;;  %v1659_v22 = vld [vmem:[%s2805_s1 + $0xf0] sm:$0xff]  ;;  %s1922_s20 = scalar_lea.vmem %s2804_s0, %s1453_s26  ;;  %s2762_s24 = scalar_lea.vmem %s2807_s3, %s1453_s26 }
  0x12   : > { %429 = vmatpush1.msra.mxu1 %v1592_v11  ;;  %341 = vmatprep.subr.mxu0 %v1599_v12  ;;  %v1640_v19 = vld [vmem:[%s2805_s1 + $0x408] sm:$0xff]  ;;  %v1652_v21 = vld [vmem:[%s2805_s1 + $0x3f8] sm:$0xff]  ;;  %v1664_v23 = vld [vmem:[%s2805_s1 + $0x3f0] sm:$0xff] }
  0x13   : > { %430 = vmatprep.subr.mxu1 %v1604_v13  ;;  %342 = vmatpush1.msra.mxu0 %v1611_v14  ;;  %2888 = vst [vmem:[#allocation2_spill] sm:$0xff] %v1652_v21  ;;  %2889 = vst [vmem:[#allocation3_spill] sm:$0xff] %v1664_v23  ;;  %v1671_v24 = vld [vmem:[%s2805_s1 + $0xe0] sm:$0xff]  ;;  %v1683_v26 = vld [vmem:[%s2805_s1 + $0xd8] sm:$0xff] }
  0x14   : > { %431 = vmatpush1.msra.mxu1 %v1616_v15  ;;  %343 = vmatprep.subr.mxu0 %v1623_v16  ;;  %v1676_v25 = vld [vmem:[%s2805_s1 + $0x3e0] sm:$0xff]  ;;  %v1688_v27 = vld [vmem:[%s2805_s1 + $0x3d8] sm:$0xff]  ;;  %v1695_v28 = vld [vmem:[%s2805_s1 + $0xc8] sm:$0xff] }
  0x15   : > { %432 = vmatprep.subr.mxu1 %v1628_v17  ;;  %344 = vmatpush1.msra.mxu0 %v1635_v18  ;;  %2890 = vst [vmem:[#allocation4_spill] sm:$0xff] %v1676_v25  ;;  %2891 = vst [vmem:[#allocation5_spill] sm:$0xff] %v1688_v27  ;;  %v1700_v29 = vld [vmem:[%s2805_s1 + $0x3c8] sm:$0xff]  ;;  %v1707_v30 = vld [vmem:[%s2805_s1 + $0xc0] sm:$0xff] }
  0x16   : > { %433 = vmatpush1.msra.mxu1 %v1640_v19  ;;  %345 = vmatprep.subr.mxu0 %v1647_v20  ;;  %2892 = vst [vmem:[#allocation6_spill] sm:$0xff] %v1700_v29  ;;  %v1712_v31 = vld [vmem:[%s2805_s1 + $0x3c0] sm:$0xff]  ;;  %v1719_v32 = vld [vmem:[%s2805_s1 + $0xb0] sm:$0xff]  ;;  %v1735_v34 = vld [vmem:[%s2805_s1 + $0xa8] sm:$0xff] }
  0x17   : > { %434 = vmatprep.subr.mxu1 %v1652_v21  ;;  %346 = vmatpush1.msra.mxu0 %v1659_v22  ;;  %2893 = vst [vmem:[#allocation7_spill] sm:$0xff] %v1712_v31  ;;  %v1724_v33 = vld [vmem:[%s2805_s1 + $0x3b0] sm:$0xff]  ;;  %v1740_v35 = vld [vmem:[%s2805_s1 + $0x3a8] sm:$0xff]  ;;  %v1747_v36 = vld [vmem:[%s2805_s1 + $0x98] sm:$0xff] }
  0x18   : > { %435 = vmatpush1.msra.mxu1 %v1664_v23  ;;  %347 = vmatprep.subr.mxu0 %v1671_v24  ;;  %2894 = vst [vmem:[#allocation8_spill] sm:$0xff] %v1724_v33  ;;  %2895 = vst [vmem:[#allocation9_spill] sm:$0xff] %v1740_v35  ;;  %v1752_v37 = vld [vmem:[%s2805_s1 + $0x398] sm:$0xff]  ;;  %v1759_v38 = vld [vmem:[%s2805_s1 + $0x90] sm:$0xff] }
  0x19   : > { %436 = vmatprep.subr.mxu1 %v1676_v25  ;;  %348 = vmatpush1.msra.mxu0 %v1683_v26  ;;  %2896 = vst [vmem:[#allocation10_spill] sm:$0xff] %v1752_v37  ;;  %v1764_v39 = vld [vmem:[%s2805_s1 + $0x390] sm:$0xff]  ;;  %v1772_v40 = vld [vmem:[%s2805_s1 + $0x80] sm:$0xff]  ;;  %v1784_v42 = vld [vmem:[%s2805_s1 + $0x78] sm:$0xff] }
  0x1a   : > { %437 = vmatpush1.msra.mxu1 %v1688_v27  ;;  %349 = vmatprep.subr.mxu0 %v1695_v28  ;;  %2897 = vst [vmem:[#allocation11_spill] sm:$0xff] %v1764_v39  ;;  %v1777_v41 = vld [vmem:[%s2805_s1 + $0x380] sm:$0xff]  ;;  %v1789_v43 = vld [vmem:[%s2805_s1 + $0x378] sm:$0xff]  ;;  %v1796_v44 = vld [vmem:[%s2805_s1 + $0x68] sm:$0xff] }
  0x1b   : > { %438 = vmatprep.subr.mxu1 %v1700_v29  ;;  %350 = vmatpush1.msra.mxu0 %v1707_v30  ;;  %2898 = vst [vmem:[#allocation12_spill] sm:$0xff] %v1777_v41  ;;  %2899 = vst [vmem:[#allocation13_spill] sm:$0xff] %v1789_v43  ;;  %v1801_v45 = vld [vmem:[%s2805_s1 + $0x368] sm:$0xff]  ;;  %v1808_v46 = vld [vmem:[%s2805_s1 + $0x60] sm:$0xff] }
  0x1c   : > { %439 = vmatpush1.msra.mxu1 %v1712_v31  ;;  %351 = vmatprep.subr.mxu0 %v1719_v32  ;;  %2900 = vst [vmem:[#allocation14_spill] sm:$0xff] %v1801_v45  ;;  %v1813_v47 = vld [vmem:[%s2805_s1 + $0x360] sm:$0xff]  ;;  %v1825_v48 = vld [vmem:[%s2805_s1 + $0x50] sm:$0xff]  ;;  %v1837_v50 = vld [vmem:[%s2805_s1 + $0x48] sm:$0xff] }
  0x1d   : > { %440 = vmatprep.subr.mxu1 %v1724_v33  ;;  %352 = vmatpush1.msra.mxu0 %v1735_v34  ;;  %2901 = vst [vmem:[#allocation15_spill] sm:$0xff] %v1813_v47  ;;  %v1830_v49 = vld [vmem:[%s2805_s1 + $0x350] sm:$0xff]  ;;  %v1842_v51 = vld [vmem:[%s2805_s1 + $0x348] sm:$0xff]  ;;  %v1849_v52 = vld [vmem:[%s2805_s1 + $0x38] sm:$0xff] }
  0x1e   : > { %441 = vmatpush1.msra.mxu1 %v1740_v35  ;;  %353 = vmatprep.subr.mxu0 %v1747_v36  ;;  %2902 = vst [vmem:[#allocation16_spill] sm:$0xff] %v1830_v49  ;;  %2903 = vst [vmem:[#allocation17_spill] sm:$0xff] %v1842_v51  ;;  %v1854_v53 = vld [vmem:[%s2805_s1 + $0x338] sm:$0xff]  ;;  %v1861_v54 = vld [vmem:[%s2805_s1 + $0x30] sm:$0xff] }
  0x1f   : > { %442 = vmatprep.subr.mxu1 %v1752_v37  ;;  %354 = vmatpush1.msra.mxu0 %v1759_v38  ;;  %2904 = vst [vmem:[#allocation18_spill] sm:$0xff] %v1854_v53  ;;  %v1866_v55 = vld [vmem:[%s2805_s1 + $0x330] sm:$0xff]  ;;  %v1874_v56 = vld [vmem:[%s2805_s1 + $0x20] sm:$0xff]  ;;  %v1886_v58 = vld [vmem:[%s2805_s1 + $0x18] sm:$0xff] }
  0x20   : > { %443 = vmatpush1.msra.mxu1 %v1764_v39  ;;  %355 = vmatprep.subr.mxu0 %v1772_v40  ;;  %2905 = vst [vmem:[#allocation19_spill] sm:$0xff] %v1866_v55  ;;  %v1879_v57 = vld [vmem:[%s2805_s1 + $0x320] sm:$0xff]  ;;  %v1891_v59 = vld [vmem:[%s2805_s1 + $0x318] sm:$0xff]  ;;  %v1898_v60 = vld [vmem:[%s2805_s1 + $0x8] sm:$0xff] }
  0x21   : > { %444 = vmatprep.subr.mxu1 %v1777_v41  ;;  %356 = vmatpush1.msra.mxu0 %v1784_v42  ;;  %2906 = vst [vmem:[#allocation20_spill] sm:$0xff] %v1879_v57  ;;  %2907 = vst [vmem:[#allocation21_spill] sm:$0xff] %v1891_v59  ;;  %v1903_v61 = vld [vmem:[%s2805_s1 + $0x308] sm:$0xff]  ;;  %v1910_v62 = vld [vmem:[%s2805_s1] sm:$0xff] }
  0x22   : > { %445 = vmatpush1.msra.mxu1 %v1789_v43  ;;  %357 = vmatprep.subr.mxu0 %v1796_v44  ;;  %2908 = vst [vmem:[#allocation22_spill] sm:$0xff] %v1903_v61  ;;  %v1915_v63 = vld [vmem:[%s2805_s1 + $0x300] sm:$0xff]  ;;  %v1994_v43 = vld [vmem:[%s2805_s1 + $0x2c8] sm:$0xff]  ;;  %v2023_v37 = vld [vmem:[%s2805_s1 + $0x290] sm:$0xff] }
  0x23   : > { %446 = vmatprep.subr.mxu1 %v1801_v45  ;;  %358 = vmatpush1.msra.mxu0 %v1808_v46  ;;  %2909 = vst [vmem:[#allocation23_spill] sm:$0xff] %v1915_v63  ;;  %v1987_v45 = vld [vmem:[%s2805_s1 + $0x2b8] sm:$0xff]  ;;  %2914 = vst [vmem:[#allocation28_spill] sm:$0xff] %v1994_v43  ;;  %v1999_v41 = vld [vmem:[%s2805_s1 + $0x2a8] sm:$0xff] }
  0x24   : > { %447 = vmatpush1.msra.mxu1 %v1813_v47  ;;  %359 = vmatprep.subr.mxu0 %v1825_v48  ;;  %v1970_v47 = vld [vmem:[%s2805_s1 + $0x2e0] sm:$0xff]  ;;  %v2035_v35 = vld [vmem:[%s2805_s1 + $0x288] sm:$0xff]  ;;  %v2047_v33 = vld [vmem:[%s2805_s1 + $0x278] sm:$0xff] }
  0x25   : > { %448 = vmatprep.subr.mxu1 %v1830_v49  ;;  %360 = vmatpush1.msra.mxu0 %v1837_v50  ;;  %v1958_v49 = vld [vmem:[%s2805_s1 + $0x178] sm:$0xff]  ;;  %2912 = vst [vmem:[#allocation26_spill] sm:$0xff] %v1970_v47  ;;  %v2011_v39 = vld [vmem:[%s2805_s1 + $0x2a0] sm:$0xff]  ;;  %v2059_v31 = vld [vmem:[%s2805_s1 + $0x270] sm:$0xff] }
  0x26   : > { %449 = vmatpush1.msra.mxu1 %v1842_v51  ;;  %361 = vmatprep.subr.mxu0 %v1849_v52  ;;  %v2817_v51 = vmov 0.0   ;;  %2911 = vst [vmem:[#allocation25_spill] sm:$0xff] %v1958_v49  ;;  %2920 = vst [vmem:[#allocation34_spill] sm:$0xff] %v2059_v31  ;;  %v2071_v29 = vld [vmem:[%s2805_s1 + $0x260] sm:$0xff]  ;;  %v2083_v27 = vld [vmem:[%s2805_s1 + $0x258] sm:$0xff] }
  0x27   : > { %450 = vmatprep.subr.mxu1 %v1854_v53  ;;  %362 = vmatpush1.msra.mxu0 %v1861_v54  ;;  %v1941_v53 = vld [vmem:[%s2805_s1 + $0x2e8] sm:$0xff]  ;;  %2922 = vst [vmem:[#allocation36_spill] sm:$0xff] %v2071_v29  ;;  %2924 = vst [vmem:[#allocation38_spill] sm:$0xff] %v2083_v27  ;;  %v2107_v23 = vld [vmem:[%s2805_s1 + $0x240] sm:$0xff] }
  0x28   : > { %451 = vmatpush1.msra.mxu1 %v1866_v55  ;;  %363 = vmatprep.subr.mxu0 %v1874_v56  ;;  %v1936_v55 = vld [vmem:[%s2805_s1 + $0x2f8] sm:$0xff]  ;;  %v2095_v25 = vld [vmem:[%s2805_s1 + $0x248] sm:$0xff]  ;;  %2928 = vst [vmem:[#allocation42_spill] sm:$0xff] %v2107_v23 }
  0x29   : > { %452 = vmatprep.subr.mxu1 %v1879_v57  ;;  %364 = vmatpush1.msra.mxu0 %v1886_v58  ;;  %v1929_v57 = vld [vmem:[%s2805_s1 + $0x2f0] sm:$0xff]  ;;  %2910 = vst [vmem:[#allocation24_spill] sm:$0xff] %v1936_v55  ;;  %2926 = vst [vmem:[#allocation40_spill] sm:$0xff] %v2095_v25  ;;  %v2239_v21 = vld [vmem:[%s2805_s1 + $0x1c8] sm:$0xff] }
  0x2a   : > { %453 = vmatpush1.msra.mxu1 %v1891_v59  ;;  %365 = vmatprep.subr.mxu0 %v1898_v60  ;;  %v1946_v59 = vld [vmem:[%s1922_s20 + $0x10] sm:$0xff]  ;;  %2950 = vst [vmem:[#allocation63_spill] sm:$0xff] %v2239_v21 }
  0x2b   : > { %454 = vmatprep.subr.mxu1 %v1903_v61  ;;  %366 = vmatpush1.msra.mxu0 %v1910_v62  ;;  %v1951_v61 = vld [vmem:[%s2805_s1 + $0x2d8] sm:$0xff] }
  0x2c   : > { %455 = vmatpush1.msra.mxu1 %v1915_v63  ;;  %367 = vmatprep.subr.mxu0 %v1929_v57  ;;  %v1963_v63 = vld [vmem:[%s2805_s1 + $0x2d0] sm:$0xff] }
  0x2d   : > { %488 = vmatprep.mubr.f32.mxu1 %v2817_v51  ;;  %1249 = vmatprep.subr.mxu1 %v1936_v55  ;;  %v1975_v51 = vld [vmem:[%s2805_s1 + $0x2c0] sm:$0xff] }
  0x2e   : > { %368 = vmatpush2.msra.mxu0 %v1941_v53  ;;  %489 = vmatmul.mubr.f32.vlgmr.msra.gmra.mxu1 %v1946_v59  ;;  %v1982_v55 = vld [vmem:[%s2805_s1 + $0x160] sm:$0xff] }
  0x2f   : > { %369 = vmatprep.subr.mxu0 %v1951_v61  ;;  %2913 = vst [vmem:[#allocation27_spill] sm:$0xff] %v1982_v55  ;;  %1250 = vmatpush3.msra.mxu1 %v1958_v49  ;;  %v2006_v49 = vld [vmem:[%s2805_s1 + $0x148] sm:$0xff] }
  0x30   : > { %370 = vmatpush2.msra.mxu0 %v1963_v63  ;;  %1251 = vmatprep.subr.mxu1 %v1970_v47  ;;  %2915 = vst [vmem:[#allocation29_spill] sm:$0xff] %v2006_v49  ;;  %v2018_v47 = vld [vmem:[%s2805_s1 + $0x2b0] sm:$0xff] }
  0x31   : > { %371 = vmatprep.subr.mxu0 %v1975_v51  ;;  %1252 = vmatpush3.msra.mxu1 %v1982_v55  ;;  %2916 = vst [vmem:[#allocation30_spill] sm:$0xff] %v2018_v47  ;;  %v2030_v55 = vld [vmem:[%s2805_s1 + $0x130] sm:$0xff] }
  0x32   : > { %372 = vmatpush2.msra.mxu0 %v1987_v45  ;;  %1253 = vmatprep.subr.mxu1 %v1994_v43  ;;  %2917 = vst [vmem:[#allocation31_spill] sm:$0xff] %v2030_v55  ;;  %v2042_v43 = vld [vmem:[%s2805_s1 + $0x298] sm:$0xff] }
  0x33   : > { %373 = vmatprep.subr.mxu0 %v1999_v41  ;;  %1254 = vmatpush3.msra.mxu1 %v2006_v49  ;;  %2918 = vst [vmem:[#allocation32_spill] sm:$0xff] %v2042_v43  ;;  %v2054_v49 = vld [vmem:[%s2805_s1 + $0x118] sm:$0xff] }
  0x34   : > { %374 = vmatpush2.msra.mxu0 %v2011_v39  ;;  %1255 = vmatprep.subr.mxu1 %v2018_v47  ;;  %2919 = vst [vmem:[#allocation33_spill] sm:$0xff] %v2054_v49  ;;  %v2066_v47 = vld [vmem:[%s2805_s1 + $0x280] sm:$0xff] }
  0x35   : > { %375 = vmatprep.subr.mxu0 %v2023_v37  ;;  %1256 = vmatpush3.msra.mxu1 %v2030_v55  ;;  %2921 = vst [vmem:[#allocation35_spill] sm:$0xff] %v2066_v47  ;;  %v2078_v55 = vld [vmem:[%s2805_s1 + $0x100] sm:$0xff] }
  0x36   : > { %376 = vmatpush2.msra.mxu0 %v2035_v35  ;;  %1257 = vmatprep.subr.mxu1 %v2042_v43  ;;  %2923 = vst [vmem:[#allocation37_spill] sm:$0xff] %v2078_v55  ;;  %v2090_v43 = vld [vmem:[%s2805_s1 + $0x268] sm:$0xff] }
  0x37   : > { %377 = vmatprep.subr.mxu0 %v2047_v33  ;;  %1258 = vmatpush3.msra.mxu1 %v2054_v49  ;;  %2925 = vst [vmem:[#allocation39_spill] sm:$0xff] %v2090_v43  ;;  %v2102_v49 = vld [vmem:[%s2805_s1 + $0xe8] sm:$0xff] }
  0x38   : > { %378 = vmatpush2.msra.mxu0 %v2059_v31  ;;  %1259 = vmatprep.subr.mxu1 %v2066_v47  ;;  %2927 = vst [vmem:[#allocation41_spill] sm:$0xff] %v2102_v49  ;;  %v2114_v47 = vld [vmem:[%s2805_s1 + $0x250] sm:$0xff]  ;;  %v2203_v31 = vld [vmem:[%s2805_s1 + $0x88] sm:$0xff] }
  0x39   : > { %379 = vmatprep.subr.mxu0 %v2071_v29  ;;  %1260 = vmatpush3.msra.mxu1 %v2078_v55  ;;  %2929 = vst [vmem:[#allocation43_spill] sm:$0xff] %v2114_v47  ;;  %v2119_v29 = vld [vmem:[%s2805_s1 + $0x230] sm:$0xff]  ;;  %2944 = vst [vmem:[#allocation57_spill] sm:$0xff] %v2203_v31 }
  0x3a   : > { %380 = vmatpush2.msra.mxu0 %v2083_v27  ;;  %2930 = vst [vmem:[#allocation44_spill] sm:$0xff] %v2119_v29  ;;  %1261 = vmatprep.subr.mxu1 %v2090_v43  ;;  %v2126_v55 = vld [vmem:[%s2805_s1 + $0xd0] sm:$0xff]  ;;  %v2131_v27 = vld [vmem:[%s2805_s1 + $0x228] sm:$0xff]  ;;  %v2138_v43 = vld [vmem:[%s2805_s1 + $0x238] sm:$0xff] }
  0x3b   : > { %381 = vmatprep.subr.mxu0 %v2095_v25  ;;  %2931 = vst [vmem:[#allocation45_spill] sm:$0xff] %v2126_v55  ;;  %2932 = vst [vmem:[#allocation46_spill] sm:$0xff] %v2131_v27  ;;  %1262 = vmatpush3.msra.mxu1 %v2102_v49  ;;  %v2143_v25 = vld [vmem:[%s2805_s1 + $0x218] sm:$0xff] }
  0x3c   : > { %382 = vmatpush2.msra.mxu0 %v2107_v23  ;;  %2933 = vst [vmem:[#allocation47_spill] sm:$0xff] %v2138_v43  ;;  %2934 = vst [vmem:[#allocation48_spill] sm:$0xff] %v2143_v25  ;;  %1263 = vmatprep.subr.mxu1 %v2114_v47  ;;  %v2150_v49 = vld [vmem:[%s2805_s1 + $0xb8] sm:$0xff]  ;;  %v2155_v23 = vld [vmem:[%s2805_s1 + $0x210] sm:$0xff] }
  0x3d   : > { %383 = vmatprep.subr.mxu0 %v2119_v29  ;;  %2935 = vst [vmem:[#allocation49_spill] sm:$0xff] %v2150_v49  ;;  %2936 = vst [vmem:[#allocation50_spill] sm:$0xff] %v2155_v23  ;;  %1264 = vmatpush3.msra.mxu1 %v2126_v55  ;;  %v2162_v47 = vld [vmem:[%s2805_s1 + $0x220] sm:$0xff] }
  0x3e   : > { %384 = vmatpush2.msra.mxu0 %v2131_v27  ;;  %2937 = vst [vmem:[#allocation51_spill] sm:$0xff] %v2162_v47  ;;  %v2167_v29 = vld [vmem:[%s2805_s1 + $0x200] sm:$0xff]  ;;  %1265 = vmatprep.subr.mxu1 %v2138_v43  ;;  %v2181_v27 = vld [vmem:[%s2805_s1 + $0x208] sm:$0xff]  ;;  %v2186_v43 = vld [vmem:[%s2805_s1 + $0x1f8] sm:$0xff] }
  0x3f   : > { %2938 = vst [vmem:[#allocation52_spill] sm:$0xff] %v2167_v29  ;;  %385 = vmatprep.subr.mxu0 %v2143_v25  ;;  %v2174_v55 = vld [vmem:[%s2805_s1 + $0xa0] sm:$0xff]  ;;  %1266 = vmatpush3.msra.mxu1 %v2150_v49  ;;  %2940 = vst [vmem:[#allocation54_spill] sm:$0xff] %v2181_v27  ;;  %v2191_v25 = vld [vmem:[%s1922_s20 + $0x28] sm:$0xff] }
  0x40   : > { %2939 = vst [vmem:[#allocation53_spill] sm:$0xff] %v2174_v55  ;;  %386 = vmatpush2.msra.mxu0 %v2155_v23  ;;  %2941 = vst [vmem:[#allocation55_spill] sm:$0xff] %v2186_v43  ;;  %1267 = vmatprep.subr.mxu1 %v2162_v47  ;;  %v2196_v49 = vld [vmem:[%s2805_s1 + $0x1e8] sm:$0xff]  ;;  %v2943_v23 = vmov 0.0   ;;  %v2208_v47 = vld [vmem:[%s2805_s1 + $0x1e0] sm:$0xff] }
  0x41   : > { %387 = vmatprep.subr.mxu0 %v2167_v29  ;;  %2942 = vst [vmem:[#allocation56_spill] sm:$0xff] %v2196_v49  ;;  %1268 = vmatpush3.msra.mxu1 %v2174_v55  ;;  %2945 = vst [vmem:[#allocation58_spill] sm:$0xff] %v2208_v47  ;;  %v2215_v55 = vld [vmem:[%s2805_s1 + $0x1f0] sm:$0xff] }
  0x42   : > { %494 = vmatprep.mubr.f32.mxu1 %v2943_v23  ;;  %1269 = vmatprep.subr.mxu1 %v2181_v27  ;;  %2946 = vst [vmem:[#allocation59_spill] sm:$0xff] %v2215_v55  ;;  %v2220_v29 = vld [vmem:[%s2805_s1 + $0x1d0] sm:$0xff] }
  0x43   : > { %388 = vmatpush2.msra.mxu0 %v2186_v43  ;;  %2947 = vst [vmem:[#allocation60_spill] sm:$0xff] %v2220_v29  ;;  %495 = vmatmul.mubr.f32.gmra.mxu1 %v2191_v25  ;;  %v2227_v27 = vld [vmem:[%s2805_s1 + $0x70] sm:$0xff]  ;;  %v2234_v43 = vld [vmem:[%s2805_s1 + $0x1d8] sm:$0xff] }
  0x44   : > { %389 = vmatprep.subr.mxu0 %v2196_v49  ;;  %2948 = vst [vmem:[#allocation61_spill] sm:$0xff] %v2227_v27  ;;  %1270 = vmatpush3.msra.mxu1 %v2203_v31  ;;  %2949 = vst [vmem:[#allocation62_spill] sm:$0xff] %v2234_v43  ;;  %v2244_v49 = vld [vmem:[%s1922_s20 + $0x40] sm:$0xff]  ;;  %v2249_v31 = vld [vmem:[%s2805_s1 + $0x1b8] sm:$0xff] }
  0x45   : > { %390 = vmatpush2.msra.mxu0 %v2208_v47  ;;  %1271 = vmatprep.subr.mxu1 %v2215_v55  ;;  %2951 = vst [vmem:[#allocation64_spill] sm:$0xff] %v2244_v49  ;;  %2952 = vst [vmem:[#allocation65_spill] sm:$0xff] %v2249_v31  ;;  %v2256_v47 = vld [vmem:[%s2805_s1 + $0x58] sm:$0xff]  ;;  %v2261_v55 = vld [vmem:[%s2805_s1 + $0x1b0] sm:$0xff] }
  0x46   : > { %391 = vmatprep.subr.mxu0 %v2220_v29  ;;  %1272 = vmatpush3.msra.mxu1 %v2227_v27  ;;  %2953 = vst [vmem:[#allocation66_spill] sm:$0xff] %v2256_v47  ;;  %2954 = vst [vmem:[#allocation67_spill] sm:$0xff] %v2261_v55  ;;  %v2268_v27 = vld [vmem:[%s2805_s1 + $0x1c0] sm:$0xff] }
  0x47   : > { %500 = vmatprep.mubr.f32.mxu1 %v2943_v23  ;;  %1273 = vmatprep.subr.mxu1 %v2234_v43  ;;  %2955 = vst [vmem:[#allocation68_spill] sm:$0xff] %v2268_v27  ;;  %v2273_v29 = vld [vmem:[%s2805_s1 + $0x1a0] sm:$0xff] }
  0x48   : > { %392 = vmatpush2.msra.mxu0 %v2239_v21  ;;  %2956 = vst [vmem:[#allocation69_spill] sm:$0xff] %v2273_v29  ;;  %501 = vmatmul.mubr.f32.gmra.mxu1 %v2244_v49  ;;  %v2280_v43 = vld [vmem:[%s2805_s1 + $0x40] sm:$0xff]  ;;  %v2287_v21 = vld [vmem:[%s2805_s1 + $0x1a8] sm:$0xff]  ;;  %v2292_v49 = vld [vmem:[%s2805_s1 + $0x198] sm:$0xff] }
  0x49   : > { %393 = vmatprep.subr.mxu0 %v2249_v31  ;;  %2957 = vst [vmem:[#allocation70_spill] sm:$0xff] %v2280_v43  ;;  %1274 = vmatpush3.msra.mxu1 %v2256_v47  ;;  %2958 = vst [vmem:[#allocation71_spill] sm:$0xff] %v2287_v21  ;;  %v2297_v31 = vld [vmem:[%s1922_s20 + $0x58] sm:$0xff]  ;;  %v2302_v47 = vld [vmem:[%s2805_s1 + $0x188] sm:$0xff] }
  0x4a   : > { %394 = vmatpush2.msra.mxu0 %v2261_v55  ;;  %2959 = vst [vmem:[#allocation72_spill] sm:$0xff] %v2292_v49  ;;  %1275 = vmatprep.subr.mxu1 %v2268_v27  ;;  %v2309_v55 = vld [vmem:[%s2805_s1 + $0x28] sm:$0xff]  ;;  %v2314_v27 = vld [vmem:[%s2805_s1 + $0x180] sm:$0xff] }
  0x4b   : > { %395 = vmatprep.subr.mxu0 %v2273_v29  ;;  %1276 = vmatpush3.msra.mxu1 %v2280_v43  ;;  %2960 = vst [vmem:[#allocation73_spill] sm:$0xff] %v2309_v55  ;;  %v2321_v43 = vld [vmem:[%s2805_s1 + $0x190] sm:$0xff] }
  0x4c   : > { %506 = vmatprep.mubr.f32.mxu1 %v2943_v23  ;;  %1277 = vmatprep.subr.mxu1 %v2287_v21  ;;  %2961 = vst [vmem:[#allocation74_spill] sm:$0xff] %v2321_v43  ;;  %v2324_v23 = vld [vmem:[%s1922_s20 + $0x8] sm:$0xff]  ;;  %v2331_v29 = vld [vmem:[%s2805_s1 + $0x10] sm:$0xff]  ;;  %v2334_v21 = vld [vmem:[%s1922_s20] sm:$0xff] }
  0x4d   : > { %396 = vmatpush2.msra.mxu0 %v2292_v49  ;;  %507 = vmatmul.mubr.f32.gmra.mxu1 %v2297_v31  ;;  %2962 = vst [vmem:[#allocation75_spill] sm:$0xff] %v2331_v29  ;;  %v2341_v49 = vld [vmem:[%s2805_s1 + $0x478] sm:$0xff] }
  0x4e   : > { %397 = vmatprep.subr.mxu0 %v2302_v47  ;;  %1278 = vmatpush3.msra.mxu1 %v2309_v55  ;;  %v2352_v55 = vld [vmem:[%s2805_s1 + $0x460] sm:$0xff] }
  0x4f   : > { %398 = vmatpush2.msra.mxu0 %v2314_v27  ;;  %1279 = vmatprep.subr.mxu1 %v2321_v43  ;;  %2963 = vst [vmem:[#allocation76_spill] sm:$0xff] %v2352_v55  ;;  %v2357_v43 = vld [vmem:[%s1922_s20 + $0x20] sm:$0xff] }
  0x50   : > { %399 = vmatprep.mubr.f32.mxu0 %v2324_v23  ;;  %1280 = vmatpush3.msra.mxu1 %v2331_v29  ;;  %v2362_v29 = vld [vmem:[%s1922_s20 + $0x18] sm:$0xff] }
  0x51   : > { %400 = vmatmul.mubr.f32.vlgmr.msra.gmra.mxu0 %v2334_v21  ;;  %577 = vmatprep.mubr.f32.mxu1 %v2324_v23 }
  0x52   : > { %1377 = vmatprep.subr.mxu0 %v2341_v49  ;;  %695 = vmatprep.subr.mxu1 %v1531_v0  ;;  %v2369_v0 = vld [vmem:[%s2805_s1 + $0x448] sm:$0xff] }
  0x53   : > { %578 = vmatmul.mubr.f32.vlgmr.msra.gmra.mxu1 %v2334_v21  ;;  %1378 = vmatpush3.msra.mxu0 %v2341_v49 }
  0x54   : > { %696 = vmatpush1.msra.mxu1 %v1541_v2  ;;  %1379 = vmatprep.subr.mxu0 %v2352_v55  ;;  %v2378_v2 = vld [vmem:[%s2805_s1 + $0x430] sm:$0xff] }
  0x55   : > { %697 = vmatprep.subr.mxu1 %v1553_v4  ;;  %405 = vmatprep.mubr.f32.mxu0 %v2357_v43  ;;  %v2383_v4 = vld [vmem:[%s1922_s20 + $0x38] sm:$0xff] }
  0x56   : > { %1380 = vmatpush3.msra.mxu0 %v2352_v55  ;;  %698 = vmatpush1.msra.mxu1 %v1565_v6  ;;  %v2388_v6 = vld [vmem:[%s1922_s20 + $0x30] sm:$0xff]  ;;  %v2395_v55 = vld [vmem:[%s2805_s1 + $0x418] sm:$0xff] }
  0x57   : > { %406 = vmatmul.mubr.f32.gmra.mxu0 %v2362_v29  ;;  %1381 = vmatprep.subr.mxu0 %v2369_v0 }
  0x58   : > { %699 = vmatprep.subr.mxu1 %v1575_v8  ;;  %1382 = vmatpush3.msra.mxu0 %v2369_v0  ;;  %v2404_v8 = vld [vmem:[%s2805_s1 + $0x400] sm:$0xff] }
  0x59   : > { %700 = vmatpush1.msra.mxu1 %v1587_v10  ;;  %1383 = vmatprep.subr.mxu0 %v2378_v2  ;;  %v2409_v10 = vld [vmem:[%s1922_s20 + $0x50] sm:$0xff] }
  0x5a   : > { %701 = vmatprep.subr.mxu1 %v1599_v12  ;;  %411 = vmatprep.mubr.f32.mxu0 %v2383_v4  ;;  %v2414_v12 = vld [vmem:[%s1922_s20 + $0x48] sm:$0xff] }
  0x5b   : > { %1384 = vmatpush3.msra.mxu0 %v2378_v2  ;;  %702 = vmatpush1.msra.mxu1 %v1611_v14  ;;  %v2421_v14 = vld [vmem:[%s2805_s1 + $0x3e8] sm:$0xff] }
  0x5c   : > { %412 = vmatmul.mubr.f32.gmra.mxu0 %v2388_v6  ;;  %1385 = vmatprep.subr.mxu0 %v2395_v55 }
  0x5d   : > { %703 = vmatprep.subr.mxu1 %v1623_v16  ;;  %1386 = vmatpush3.msra.mxu0 %v2395_v55  ;;  %v2430_v16 = vld [vmem:[%s2805_s1 + $0x3d0] sm:$0xff] }
  0x5e   : > { %704 = vmatpush1.msra.mxu1 %v1635_v18  ;;  %1387 = vmatprep.subr.mxu0 %v2404_v8  ;;  %v2439_v18 = vld [vmem:[%s2805_s1 + $0x3b8] sm:$0xff] }
  0x5f   : > { %705 = vmatprep.subr.mxu1 %v1647_v20  ;;  %417 = vmatprep.mubr.f32.mxu0 %v2409_v10  ;;  %v2448_v20 = vld [vmem:[%s2805_s1 + $0x3a0] sm:$0xff] }
  0x60   : > { %1388 = vmatpush3.msra.mxu0 %v2404_v8  ;;  %706 = vmatpush1.msra.mxu1 %v1659_v22  ;;  %v2457_v22 = vld [vmem:[%s2805_s1 + $0x388] sm:$0xff] }
  0x61   : > { %418 = vmatmul.mubr.f32.gmra.mxu0 %v2414_v12  ;;  %1389 = vmatprep.subr.mxu0 %v2421_v14 }
  0x62   : > { %707 = vmatprep.subr.mxu1 %v1671_v24  ;;  %1390 = vmatpush3.msra.mxu0 %v2421_v14  ;;  %v2466_v24 = vld [vmem:[%s2805_s1 + $0x370] sm:$0xff] }
  0x63   : > { %708 = vmatpush1.msra.mxu1 %v1683_v26  ;;  %1391 = vmatprep.subr.mxu0 %v2430_v16  ;;  %v2475_v26 = vld [vmem:[%s2805_s1 + $0x358] sm:$0xff] }
  0x64   : > { %709 = vmatprep.subr.mxu1 %v1695_v28  ;;  %1392 = vmatpush3.msra.mxu0 %v2430_v16  ;;  %v2484_v28 = vld [vmem:[%s2805_s1 + $0x340] sm:$0xff] }
  0x65   : > { %710 = vmatpush1.msra.mxu1 %v1707_v30  ;;  %1393 = vmatprep.subr.mxu0 %v2439_v18  ;;  %v2493_v30 = vld [vmem:[%s2805_s1 + $0x328] sm:$0xff] }
  0x66   : > { %711 = vmatprep.subr.mxu1 %v1719_v32  ;;  %1394 = vmatpush3.msra.mxu0 %v2439_v18  ;;  %v2504_v32 = vld [vmem:[%s2805_s1 + $0x310] sm:$0xff] }
  0x67   : > { %712 = vmatpush1.msra.mxu1 %v1735_v34  ;;  %1395 = vmatprep.subr.mxu0 %v2448_v20  ;;  %v2975_v34 = vld [vmem:[#allocation44_spill] sm:$0xff] }
  0x68   : > { %713 = vmatprep.subr.mxu1 %v1747_v36  ;;  %1396 = vmatpush3.msra.mxu0 %v2448_v20  ;;  %v2977_v36 = vld [vmem:[#allocation46_spill] sm:$0xff] }
  0x69   : > { %714 = vmatpush1.msra.mxu1 %v1759_v38  ;;  %1397 = vmatprep.subr.mxu0 %v2457_v22  ;;  %v2979_v38 = vld [vmem:[#allocation48_spill] sm:$0xff] }
  0x6a   : > { %715 = vmatprep.subr.mxu1 %v1772_v40  ;;  %1398 = vmatpush3.msra.mxu0 %v2457_v22  ;;  %v2981_v40 = vld [vmem:[#allocation50_spill] sm:$0xff] }
  0x6b   : > { %716 = vmatpush1.msra.mxu1 %v1784_v42  ;;  %1399 = vmatprep.subr.mxu0 %v2466_v24  ;;  %v2983_v42 = vld [vmem:[#allocation52_spill] sm:$0xff] }
  0x6c   : > { %717 = vmatprep.subr.mxu1 %v1796_v44  ;;  %1400 = vmatpush3.msra.mxu0 %v2466_v24  ;;  %v2984_v44 = vld [vmem:[#allocation12_spill] sm:$0xff] }
  0x6d   : > { %718 = vmatpush1.msra.mxu1 %v1808_v46  ;;  %1401 = vmatprep.subr.mxu0 %v2475_v26  ;;  %v2986_v46 = vld [vmem:[#allocation13_spill] sm:$0xff] }
  0x6e   : > { %719 = vmatprep.subr.mxu1 %v1825_v48  ;;  %1402 = vmatpush3.msra.mxu0 %v2475_v26  ;;  %v2987_v48 = vld [vmem:[#allocation56_spill] sm:$0xff] }
  0x6f   : > { %720 = vmatpush1.msra.mxu1 %v1837_v50  ;;  %1403 = vmatprep.subr.mxu0 %v2484_v28  ;;  %v2988_v50 = vld [vmem:[#allocation14_spill] sm:$0xff] }
  0x70   : > { %721 = vmatprep.subr.mxu1 %v1849_v52  ;;  %1404 = vmatpush3.msra.mxu0 %v2484_v28  ;;  %v2990_v52 = vld [vmem:[#allocation15_spill] sm:$0xff] }
  0x71   : > { %722 = vmatpush1.msra.mxu1 %v1861_v54  ;;  %582 = vmatprep.mubr.f32.mxu1 %v2357_v43  ;;  %v2992_v54 = vld [vmem:[#allocation16_spill] sm:$0xff] }
  0x72   : > { %1405 = vmatprep.subr.mxu0 %v2493_v30  ;;  %723 = vmatprep.subr.mxu1 %v1874_v56  ;;  %v2993_v56 = vld [vmem:[#allocation63_spill] sm:$0xff] }
  0x73   : > { %583 = vmatmul.mubr.f32.gmra.mxu1 %v2362_v29  ;;  %1406 = vmatpush3.msra.mxu0 %v2493_v30 }
  0x74   : > { %724 = vmatpush1.msra.mxu1 %v1886_v58  ;;  %1407 = vmatprep.subr.mxu0 %v2504_v32  ;;  %v2995_v58 = vld [vmem:[#allocation64_spill] sm:$0xff] }
  0x75   : > { %725 = vmatprep.subr.mxu1 %v1898_v60  ;;  %1408 = vmatpush3.msra.mxu0 %v2504_v32  ;;  %v2996_v60 = vld [vmem:[#allocation65_spill] sm:$0xff] }
  0x76   : > { %1409 = vmatprep.mubr.f32.mxu0 %v1946_v59  ;;  %726 = vmatpush1.msra.mxu1 %v1910_v62  ;;  %v2998_v62 = vld [vmem:[#allocation67_spill] sm:$0xff] }
  0x77   : > { %1410 = vmatmul.mubr.f32.vlgmr.msra.gmra.mxu0 %v2191_v25  ;;  %727 = vmatprep.subr.mxu1 %v1929_v57  ;;  %v2994_v57 = vld [vmem:[#allocation17_spill] sm:$0xff] }
  0x78   : > { %784 = vmatprep.subr.mxu0 %v1536_v1  ;;  %728 = vmatpush2.msra.mxu1 %v1941_v53  ;;  %v2964_v1 = vld [vmem:[#allocation2_spill] sm:$0xff]  ;;  %v2991_v53 = vld [vmem:[#allocation60_spill] sm:$0xff] }
  0x79   : > { %785 = vmatpush1.msra.mxu0 %v1548_v3  ;;  %729 = vmatprep.subr.mxu1 %v1951_v61  ;;  %v2965_v3 = vld [vmem:[#allocation34_spill] sm:$0xff] }
  0x7a   : > { %786 = vmatprep.subr.mxu0 %v1558_v5  ;;  %730 = vmatpush2.msra.mxu1 %v1963_v63  ;;  %v2966_v5 = vld [vmem:[#allocation3_spill] sm:$0xff]  ;;  %v2997_v61 = vld [vmem:[#allocation18_spill] sm:$0xff] }
  0x7b   : > { %787 = vmatpush1.msra.mxu0 %v1570_v7  ;;  %731 = vmatprep.subr.mxu1 %v1975_v51  ;;  %v2967_v7 = vld [vmem:[#allocation36_spill] sm:$0xff]  ;;  %v2989_v51 = vld [vmem:[#allocation58_spill] sm:$0xff]  ;;  %v2999_v63 = vld [vmem:[#allocation19_spill] sm:$0xff] }
  0x7c   : > { %788 = vmatprep.subr.mxu0 %v1582_v9  ;;  %732 = vmatpush2.msra.mxu1 %v1987_v45  ;;  %v2968_v9 = vld [vmem:[#allocation4_spill] sm:$0xff]  ;;  %v2985_v45 = vld [vmem:[#allocation55_spill] sm:$0xff] }
  0x7d   : > { %789 = vmatpush1.msra.mxu0 %v1592_v11  ;;  %733 = vmatprep.subr.mxu1 %v1999_v41  ;;  %v2969_v11 = vld [vmem:[#allocation38_spill] sm:$0xff]  ;;  %v2982_v41 = vld [vmem:[#allocation11_spill] sm:$0xff] }
  0x7e   : > { %790 = vmatprep.subr.mxu0 %v1604_v13  ;;  %734 = vmatpush2.msra.mxu1 %v2011_v39  ;;  %v2970_v13 = vld [vmem:[#allocation5_spill] sm:$0xff]  ;;  %v2980_v39 = vld [vmem:[#allocation10_spill] sm:$0xff] }
  0x7f   : > { %791 = vmatpush1.msra.mxu0 %v1616_v15  ;;  %735 = vmatprep.subr.mxu1 %v2023_v37  ;;  %v2971_v15 = vld [vmem:[#allocation40_spill] sm:$0xff]  ;;  %v2978_v37 = vld [vmem:[#allocation9_spill] sm:$0xff] }
  0x80   : > { %792 = vmatprep.subr.mxu0 %v1628_v17  ;;  %736 = vmatpush2.msra.mxu1 %v2035_v35  ;;  %v2972_v17 = vld [vmem:[#allocation6_spill] sm:$0xff]  ;;  %v2976_v35 = vld [vmem:[#allocation8_spill] sm:$0xff] }
  0x81   : > { %793 = vmatpush1.msra.mxu0 %v1640_v19  ;;  %737 = vmatprep.subr.mxu1 %v2047_v33  ;;  %v2973_v19 = vld [vmem:[#allocation42_spill] sm:$0xff]  ;;  %v2974_v33 = vld [vmem:[#allocation7_spill] sm:$0xff] }
  0x82   : > { %794 = vmatprep.subr.mxu0 %v2964_v1  ;;  %738 = vmatpush2.msra.mxu1 %v2965_v3  ;;  %v2580_v1 = vmul.f32 %v2324_v23, %v2324_v23  ;;  %v3000_v3 = vld [vmem:[#allocation69_spill] sm:$0xff] }
  0x83   : > { %795 = vmatpush1.msra.mxu0 %v2966_v5  ;;  %739 = vmatprep.subr.mxu1 %v2967_v7  ;;  %v3001_v5 = vld [vmem:[#allocation20_spill] sm:$0xff]  ;;  %v2586_v7 = vmul.f32 %v1946_v59, %v1946_v59  ;;  %v2600_v59 = vmul.f32 %v2357_v43, %v2357_v43 }
  0x84   : > { %796 = vmatprep.subr.mxu0 %v2968_v9  ;;  %740 = vmatpush2.msra.mxu1 %v2969_v11  ;;  %v2590_v9 = vmul.f32 %v2334_v21, %v2334_v21  ;;  %v3002_v11 = vld [vmem:[#allocation72_spill] sm:$0xff] }
  0x85   : > { %797 = vmatpush1.msra.mxu0 %v2970_v13  ;;  %741 = vmatprep.subr.mxu1 %v2971_v15  ;;  %v3003_v13 = vld [vmem:[#allocation21_spill] sm:$0xff]  ;;  %v3004_v15 = vld [vmem:[#allocation22_spill] sm:$0xff] }
  0x86   : > { %798 = vmatprep.subr.mxu0 %v2972_v17  ;;  %742 = vmatpush2.msra.mxu1 %v2973_v19  ;;  %v3005_v17 = vld [vmem:[#allocation23_spill] sm:$0xff]  ;;  %v3006_v19 = vmov 0.0  }
  0x87   : > { %799 = vmatpush1.msra.mxu0 %v2974_v33  ;;  %743 = vmatprep.subr.mxu1 %v2975_v34  ;;  %v3007_v33 = vld [vmem:[#allocation24_spill] sm:$0xff]  ;;  %v3008_v34 = vld [vmem:[#allocation25_spill] sm:$0xff] }
  0x88   : > { %800 = vmatprep.subr.mxu0 %v2976_v35  ;;  %744 = vmatpush2.msra.mxu1 %v2977_v36  ;;  %v3009_v35 = vld [vmem:[#allocation26_spill] sm:$0xff]  ;;  %v3010_v36 = vld [vmem:[#allocation27_spill] sm:$0xff] }
  0x89   : > { %801 = vmatpush1.msra.mxu0 %v2978_v37  ;;  %745 = vmatprep.subr.mxu1 %v2979_v38  ;;  %v3011_v37 = vld [vmem:[#allocation28_spill] sm:$0xff] }
  0x8a   : > { %802 = vmatprep.subr.mxu0 %v2980_v39  ;;  %746 = vmatpush2.msra.mxu1 %v2981_v40  ;;  %v3012_v38 = vld [vmem:[#allocation76_spill] sm:$0xff]  ;;  %v3013_v39 = vld [vmem:[#allocation29_spill] sm:$0xff]  ;;  %v2634_v40 = vmul.f32 %v2388_v6, %v2388_v6 }
  0x8b   : > { %803 = vmatpush1.msra.mxu0 %v2982_v41  ;;  %587 = vmatprep.mubr.f32.mxu1 %v2383_v4  ;;  %v3014_v41 = vld [vmem:[#allocation30_spill] sm:$0xff] }
  0x8c   : > { %747 = vmatprep.subr.mxu1 %v2983_v42  ;;  %804 = vmatprep.subr.mxu0 %v2984_v44  ;;  %v3015_v42 = vld [vmem:[#allocation31_spill] sm:$0xff]  ;;  %v2650_v44 = vmul.f32 %v2409_v10, %v2409_v10 }
  0x8d   : > { %588 = vmatmul.mubr.f32.gmra.mxu1 %v2388_v6  ;;  %805 = vmatpush1.msra.mxu0 %v2986_v46  ;;  %v3017_v46 = vld [vmem:[#allocation33_spill] sm:$0xff] }
  0x8e   : > { %748 = vmatpush2.msra.mxu1 %v2985_v45  ;;  %806 = vmatprep.subr.mxu0 %v2988_v50  ;;  %v3016_v45 = vld [vmem:[#allocation32_spill] sm:$0xff]  ;;  %v3018_v50 = vld [vmem:[#allocation35_spill] sm:$0xff] }
  0x8f   : > { %749 = vmatprep.subr.mxu1 %v2987_v48  ;;  %807 = vmatpush1.msra.mxu0 %v2990_v52  ;;  %v692_v48 = vmul.f32 %v2414_v12, %v2414_v12  ;;  %v3021_v52 = vld [vmem:[#allocation41_spill] sm:$0xff] }
  0x90   : > { %750 = vmatpush2.msra.mxu1 %v2989_v51  ;;  %592 = vmatprep.mubr.f32.mxu1 %v2409_v10  ;;  %v3019_v51 = vld [vmem:[#allocation37_spill] sm:$0xff] }
  0x91   : > { %751 = vmatprep.subr.mxu1 %v2991_v53  ;;  %808 = vmatprep.subr.mxu0 %v2992_v54  ;;  %v3023_v53 = vld [vmem:[#allocation45_spill] sm:$0xff]  ;;  %v3024_v54 = vld [vmem:[#allocation47_spill] sm:$0xff] }
  0x92   : > { %593 = vmatmul.mubr.f32.gmra.mxu1 %v2414_v12  ;;  %809 = vmatpush1.msra.mxu0 %v2994_v57  ;;  %v3028_v57 = vld [vmem:[#allocation54_spill] sm:$0xff] }
  0x93   : > { %752 = vmatpush2.msra.mxu1 %v2993_v56  ;;  %1412 = vmatprep.mubr.f32.mxu0 %v2995_v58  ;;  %v3026_v56 = vld [vmem:[#allocation51_spill] sm:$0xff] }
  0x94   : > { %753 = vmatprep.subr.mxu1 %v2996_v60  ;;  %810 = vmatprep.subr.mxu0 %v2997_v61  ;;  %v3032_v60 = vld [vmem:[#allocation62_spill] sm:$0xff]  ;;  %v3034_v61 = vld [vmem:[#allocation68_spill] sm:$0xff] }
  0x95   : > { %1413 = vmatmul.mubr.f32.gmra.mxu0 %v2297_v31  ;;  %754 = vmatpush2.msra.mxu1 %v2998_v62  ;;  %v3036_v62 = vld [vmem:[#allocation71_spill] sm:$0xff] }
  0x96   : > { %811 = vmatpush1.msra.mxu0 %v2999_v63  ;;  %755 = vmatprep.subr.mxu1 %v3000_v3  ;;  %v3038_v63 = vld [vmem:[#allocation74_spill] sm:$0xff] }
  0x97   : > { %812 = vmatprep.subr.mxu0 %v3001_v5  ;;  %756 = vmatpush2.msra.mxu1 %v3002_v11 }
  0x98   : > { %813 = vmatpush1.msra.mxu0 %v3003_v13  ;;  %757 = vmatprep.subr.mxu1 %v2302_v47  ;;  %v2614_v47 = vmul.f32 %v2191_v25, %v2191_v25  ;;  %v2626_v25 = vmul.f32 %v2383_v4, %v2383_v4 }
  0x99   : > { %814 = vmatprep.subr.mxu0 %v3004_v15  ;;  %758 = vmatpush2.msra.mxu1 %v2314_v27  ;;  %v2610_v27 = vmul.f32 %v2362_v29, %v2362_v29 }
  0x9a   : > { %759 = vmatprep.mubr.f32.mxu1 %v2580_v1  ;;  %815 = vmatpush1.msra.mxu0 %v3005_v17 }
  0x9b   : > { %848 = vmatprep.mubr.f32.mxu0 %v3006_v19  ;;  %760 = vmatmul.mubr.f32.vlgmr.msra.gmra.mxu1 %v2590_v9 }
  0x9c   : > { %849 = vmatmul.mubr.f32.vlgmr.msra.gmra.mxu0 %v2586_v7  ;;  %1313 = vmatprep.subr.mxu0 %v3007_v33 }
  0x9d   : > { %1415 = vmatprep.subr.mxu1 %v2341_v49  ;;  %1314 = vmatpush3.msra.mxu0 %v3008_v34 }
  0x9e   : > { %765 = vmatprep.mubr.f32.mxu1 %v2600_v59  ;;  %1315 = vmatprep.subr.mxu0 %v3009_v35 }
  0x9f   : > { %854 = vmatprep.mubr.f32.mxu0 %v3006_v19  ;;  %1316 = vmatpush3.msra.mxu0 %v3010_v36 }
  0xa0   : > { %1416 = vmatpush3.msra.mxu1 %v2341_v49  ;;  %855 = vmatmul.mubr.f32.gmra.mxu0 %v2614_v47  ;;  %v2638_v49 = vmul.f32 %v2995_v58, %v2995_v58  ;;  %v3030_v58 = vld [vmem:[#allocation59_spill] sm:$0xff] }
  0xa1   : > { %766 = vmatmul.mubr.f32.gmra.mxu1 %v2610_v27  ;;  %1317 = vmatprep.subr.mxu0 %v3011_v37 }
  0xa2   : > { %1417 = vmatprep.subr.mxu1 %v3012_v38  ;;  %1318 = vmatpush3.msra.mxu0 %v3013_v39 }
  0xa3   : > { %1418 = vmatpush3.msra.mxu1 %v3012_v38  ;;  %1319 = vmatprep.subr.mxu0 %v3014_v41 }
  0xa4   : > { %1419 = vmatprep.subr.mxu1 %v2369_v0  ;;  %771 = vmatprep.mubr.f32.mxu1 %v2626_v25 }
  0xa5   : > { %860 = vmatprep.mubr.f32.mxu0 %v3006_v19  ;;  %1320 = vmatpush3.msra.mxu0 %v3015_v42 }
  0xa6   : > { %1420 = vmatpush3.msra.mxu1 %v2369_v0  ;;  %861 = vmatmul.mubr.f32.gmra.mxu0 %v2638_v49  ;;  %v694_v0 = vmul.f32 %v2297_v31, %v2297_v31  ;;  %v3022_v31 = vld [vmem:[#allocation43_spill] sm:$0xff] }
  0xa7   : > { %772 = vmatmul.mubr.f32.gmra.mxu1 %v2634_v40  ;;  %1321 = vmatprep.subr.mxu0 %v3016_v45 }
  0xa8   : > { %1421 = vmatprep.subr.mxu1 %v2378_v2  ;;  %1322 = vmatpush3.msra.mxu0 %v3017_v46 }
  0xa9   : > { %1422 = vmatpush3.msra.mxu1 %v2378_v2  ;;  %1323 = vmatprep.subr.mxu0 %v3018_v50  ;;  %v3020_v2 = vld [vmem:[#allocation39_spill] sm:$0xff] }
  0xaa   : > { %1423 = vmatprep.subr.mxu1 %v2395_v55  ;;  %777 = vmatprep.mubr.f32.mxu1 %v2650_v44 }
  0xab   : > { %866 = vmatprep.mubr.f32.mxu0 %v3006_v19  ;;  %1324 = vmatpush3.msra.mxu0 %v3019_v51 }
  0xac   : > { %1424 = vmatpush3.msra.mxu1 %v2395_v55  ;;  %867 = vmatmul.mubr.f32.gmra.mxu0 %v694_v0  ;;  %v3025_v55 = vld [vmem:[#allocation49_spill] sm:$0xff] }
  0xad   : > { %778 = vmatmul.mubr.f32.gmra.mxu1 %v692_v48  ;;  %1325 = vmatprep.subr.mxu0 %v3020_v2 }
  0xae   : > { %1425 = vmatprep.subr.mxu1 %v2404_v8  ;;  %1326 = vmatpush3.msra.mxu0 %v3021_v52 }
  0xaf   : > { %1426 = vmatpush3.msra.mxu1 %v2404_v8  ;;  %1327 = vmatprep.subr.mxu0 %v3022_v31  ;;  %v3027_v8 = vld [vmem:[#allocation53_spill] sm:$0xff] }
  0xb0   : > { %1427 = vmatprep.subr.mxu1 %v2421_v14  ;;  %1328 = vmatpush3.msra.mxu0 %v3023_v53 }
  0xb1   : > { %1428 = vmatpush3.msra.mxu1 %v2421_v14  ;;  %1329 = vmatprep.subr.mxu0 %v3024_v54  ;;  %v3029_v14 = vld [vmem:[#allocation57_spill] sm:$0xff] }
  0xb2   : > { %1429 = vmatprep.subr.mxu1 %v2430_v16  ;;  %1330 = vmatpush3.msra.mxu0 %v3025_v55 }
  0xb3   : > { %1430 = vmatpush3.msra.mxu1 %v2430_v16  ;;  %1331 = vmatprep.subr.mxu0 %v3026_v56  ;;  %v3031_v16 = vld [vmem:[#allocation61_spill] sm:$0xff] }
  0xb4   : > { %1431 = vmatprep.subr.mxu1 %v2439_v18  ;;  %1332 = vmatpush3.msra.mxu0 %v3027_v8 }
  0xb5   : > { %1432 = vmatpush3.msra.mxu1 %v2439_v18  ;;  %1333 = vmatprep.subr.mxu0 %v3028_v57  ;;  %v3033_v18 = vld [vmem:[#allocation66_spill] sm:$0xff] }
  0xb6   : > { %1433 = vmatprep.subr.mxu1 %v2448_v20  ;;  %1334 = vmatpush3.msra.mxu0 %v3029_v14 }
  0xb7   : > { %1434 = vmatpush3.msra.mxu1 %v2448_v20  ;;  %1335 = vmatprep.subr.mxu0 %v3030_v58  ;;  %v3035_v20 = vld [vmem:[#allocation70_spill] sm:$0xff] }
  0xb8   : > { %1435 = vmatprep.subr.mxu1 %v2457_v22  ;;  %1336 = vmatpush3.msra.mxu0 %v3031_v16 }
  0xb9   : > { %1436 = vmatpush3.msra.mxu1 %v2457_v22  ;;  %1337 = vmatprep.subr.mxu0 %v3032_v60  ;;  %v3037_v22 = vld [vmem:[#allocation73_spill] sm:$0xff] }
  0xba   : > { %1437 = vmatprep.subr.mxu1 %v2466_v24  ;;  %1338 = vmatpush3.msra.mxu0 %v3033_v18 }
  0xbb   : > { %1438 = vmatpush3.msra.mxu1 %v2466_v24  ;;  %1339 = vmatprep.subr.mxu0 %v3034_v61  ;;  %v3039_v24 = vld [vmem:[#allocation75_spill] sm:$0xff] }
  0xbc   : > { %1439 = vmatprep.subr.mxu1 %v2475_v26  ;;  %1340 = vmatpush3.msra.mxu0 %v3035_v20 }
  0xbd   : > { %1440 = vmatpush3.msra.mxu1 %v2475_v26  ;;  %1341 = vmatprep.subr.mxu0 %v3036_v62 }
  0xbe   : > { %1441 = vmatprep.subr.mxu1 %v2484_v28  ;;  %1342 = vmatpush3.msra.mxu0 %v3037_v22 }
  0xbf   : > { %1442 = vmatpush3.msra.mxu1 %v2484_v28  ;;  %1343 = vmatprep.subr.mxu0 %v3038_v63 }
  0xc0   : > { %1443 = vmatprep.subr.mxu1 %v2493_v30  ;;  %1344 = vmatpush3.msra.mxu0 %v3039_v24 }
  0xc1   : > { %937 = vmatprep.mubr.f32.mxu0 %v2580_v1  ;;  %1444 = vmatpush3.msra.mxu1 %v2493_v30 }
  0xc2   : > { %938 = vmatmul.mubr.f32.vlgmr.msra.gmra.mxu0 %v2590_v9  ;;  %1445 = vmatprep.subr.mxu1 %v2504_v32 }
  0xc3   : > { %1447 = vmatprep.mubr.f32.mxu1 %v2586_v7  ;;  %1446 = vmatpush3.msra.mxu1 %v2504_v32 }
  0xc4   : > { %942 = vmatprep.mubr.f32.mxu0 %v2600_v59  ;;  %1448 = vmatmul.mubr.f32.vlgmr.msra.gmra.mxu1 %v2614_v47 }
  0xc5   : > { %1450 = vmatprep.mubr.f32.mxu1 %v2638_v49 }
  0xc6   : > { %943 = vmatmul.mubr.f32.gmra.mxu0 %v2610_v27 }
  0xc7   : > { %947 = vmatprep.mubr.f32.mxu0 %v2626_v25 }
  0xc8   : > { %1451 = vmatmul.mubr.f32.gmra.mxu1 %v694_v0 }
  0xca   : > { %948 = vmatmul.mubr.f32.gmra.mxu0 %v2634_v40 }
  0xcb   : > { %952 = vmatprep.mubr.f32.mxu0 %v2650_v44 }
  0xce   : > { %953 = vmatmul.mubr.f32.gmra.mxu0 %v692_v48 }
  0xee   : > { %v490_v26 = vpop.f32.mrf.mxu1 }
  0xf0   : > { %v492_v28 = vpop.f32.mrf.mxu1 }
 0x103   : > { %v496_v30 = vpop.f32.mrf.mxu1 }
 0x105   : > { %v498_v32 = vpop.f32.mrf.mxu1 }
 0x108   : > { %v502_v3 = vpop.f32.mrf.mxu1 }
 0x10a   : > { %v504_v7 = vpop.f32.mrf.mxu1 }
 0x10d   : > { %v508_v11 = vpop.f32.mrf.mxu1 }
 0x10f   : > { %v2718_v15 = vpop.f32.mrf.mxu1 }
 0x111   : > { %v401_v1 = vpop.f32.mrf.mxu0 }
 0x112   : > { %v491_v49 = vadd.f32 %v490_v26, %v401_v1 }
 0x113   : > { %v403_v5 = vpop.f32.mrf.mxu0  ;;  %v2720_v17 = vpop.f32.mrf.mxu1 }
 0x114   : > { %v493_v42 = vadd.f32 %v492_v28, %v403_v5  ;;  %v1043_v45 = vmul.f32 0.020833334, %v491_v49 }
 0x115   : > { %v2722_v33 = vpop.f32.mrf.mxu1 }
 0x116   : > { %v1044_v50 = vmul.f32 0.020833334, %v493_v42  ;;  %v1067_v53 = vmul.f32 %v1043_v45, %v1043_v45 }
 0x117   : > { %v407_v9 = vpop.f32.mrf.mxu0 }
 0x118   : > { %v497_v46 = vadd.f32 %v496_v30, %v407_v9  ;;  %v1068_v8 = vmul.f32 %v1044_v50, %v1044_v50 }
 0x119   : > { %v409_v13 = vpop.f32.mrf.mxu0 }
 0x11a   : > { %v499_v2 = vadd.f32 %v498_v32, %v409_v13  ;;  %v1046_v56 = vmul.f32 0.020833334, %v497_v46  ;;  %v1141_v13 = vlaneseq }
 0x11c   : > { %v413_v59 = vpop.f32.mrf.mxu0  ;;  %v1047_v18 = vmul.f32 0.020833334, %v499_v2  ;;  %v1070_v26 = vmul.f32 %v1046_v56, %v1046_v56 }
 0x11d   : > { %v503_v57 = vadd.f32 %v502_v3, %v413_v59 }
 0x11e   : > { %v415_v19 = vpop.f32.mrf.mxu0  ;;  %v1071_v9 = vmul.f32 %v1047_v18, %v1047_v18 }
 0x11f   : > { %v505_v20 = vadd.f32 %v504_v7, %v415_v19  ;;  %v1049_v32 = vmul.f32 0.020833334, %v503_v57 }
 0x121   : > { %v419_v47 = vpop.f32.mrf.mxu0  ;;  %v1050_v49 = vmul.f32 0.020833334, %v505_v20  ;;  %v1073_v50 = vmul.f32 %v1049_v32, %v1049_v32  ;;  %v2750_v20 = vld [vmem:[%s2806_s2] sm:$0x7] }
 0x122   : > { %v509_v42 = vadd.f32 %v508_v11, %v419_v47  ;;  %v2745_v11 = vshrl.u32 %v1141_v13, 7 }
 0x123   : > { %v421_v35 = vpop.f32.mrf.mxu0  ;;  %v1074_v56 = vmul.f32 %v1050_v49, %v1050_v49 }
 0x133   : > { %v2724_v27 = vpop.f32.mrf.mxu1 }
 0x135   : > { %v2726_v34 = vpop.f32.mrf.mxu1 }
 0x137   : > { %v2730_v25 = vpop.f32.mrf.mxu0 }
 0x139   : > { %v2734_v38 = vpop.f32.mrf.mxu0 }
 0x14d   : > { %v2728_v36 = vpop.f32.mrf.mxu1 }
 0x14f   : > { %v2732_v37 = vpop.f32.mrf.mxu1 }
 0x152   : > { %v2738_v40 = vpop.f32.mrf.mxu1 }
 0x154   : > { %v2742_v44 = vpop.f32.mrf.mxu1 }
 0x155   : > { %v2736_v39 = vpop.f32.mrf.mxu0 }
 0x157   : > { %v2740_v41 = vpop.f32.mrf.mxu0 }
 0x15b   : > { %v761_v48 = vpop.f32.mrf.mxu1 }
 0x15c   : > { %v850_v0 = vpop.f32.mrf.mxu0 }
 0x15d   : > { %v851_v51 = vadd.f32 %v850_v0, %v761_v48  ;;  %v763_v52 = vpop.f32.mrf.mxu1 }
 0x15e   : > { %v852_v31 = vpop.f32.mrf.mxu0 }
 0x15f   : > { %v1055_v54 = vmul.f32 0.020833334, %v851_v51  ;;  %v853_v55 = vadd.f32 %v852_v31, %v763_v52  ;;  %v511_v51 = vadd.f32 %v2718_v15, %v421_v35 }
 0x160   : > { %v856_v60 = vpop.f32.mrf.mxu0 }
 0x161   : > { %v1079_v14 = vsub.f32 %v1055_v54, %v1067_v53  ;;  %v1056_v58 = vmul.f32 0.020833334, %v853_v55  ;;  %v767_v16 = vpop.f32.mrf.mxu1 }
 0x162   : > { %v857_v61 = vadd.f32 %v856_v60, %v767_v16  ;;  %v858_v24 = vpop.f32.mrf.mxu0 }
 0x163   : > { %v1091_v62 = vmax.f32 %v1079_v14, 0.0  ;;  %v1080_v22 = vsub.f32 %v1056_v58, %v1068_v8  ;;  %v769_v63 = vpop.f32.mrf.mxu1  ;;  %v1052_v8 = vmul.f32 0.020833334, %v509_v42  ;;  %v1053_v58 = vmul.f32 0.020833334, %v511_v51 }
 0x164   : > { %v1058_v28 = vmul.f32 0.020833334, %v857_v61  ;;  %v859_v30 = vadd.f32 %v858_v24, %v769_v63 }
 0x165   : > { %v1103_v1 = vadd.f32 1e-05, %v1091_v62  ;;  %v1092_v5 = vmax.f32 %v1080_v22, 0.0  ;;  %v1076_v61 = vmul.f32 %v1052_v8, %v1052_v8  ;;  %v1143_v62 = vsub.s32 0, %v2745_v11 }
 0x166   : > { %v1082_v3 = vsub.f32 %v1058_v28, %v1070_v26  ;;  %v1059_v59 = vmul.f32 0.020833334, %v859_v30  ;;  %v862_v7 = vpop.f32.mrf.mxu0  ;;  %v1077_v32 = vmul.f32 %v1053_v58, %v1053_v58 }
 0x167   : > { %1463 = vrsqrt.f32 %v1103_v1  ;;  %v1104_v45 = vadd.f32 1e-05, %v1092_v5  ;;  %v773_v46 = vpop.f32.mrf.mxu1  ;;  %v1147_v1 = vsub.s32 1, %v2745_v11 }
 0x168   : > { %v1094_v19 = vmax.f32 %v1082_v3, 0.0  ;;  %v1083_v48 = vsub.f32 %v1059_v59, %v1071_v9  ;;  %v863_v0 = vadd.f32 %v862_v7, %v773_v46  ;;  %v864_v52 = vpop.f32.mrf.mxu0  ;;  %v1144_v3 = vrot.slane %v2750_v20, %v1143_v62 }
 0x169   : > { %1465 = vrsqrt.f32 %v1104_v45  ;;  %v775_v2 = vpop.f32.mrf.mxu1  ;;  %v1148_v46 = vrot.slane %v2750_v20, %v1147_v1 }
 0x16a   : > { %v1106_v31 = vadd.f32 1e-05, %v1094_v19  ;;  %v1095_v53 = vmax.f32 %v1083_v48, 0.0  ;;  %v1061_v54 = vmul.f32 0.020833334, %v863_v0  ;;  %v865_v55 = vadd.f32 %v864_v52, %v775_v2 }
 0x16c   : > { %1467 = vrsqrt.f32 %v1106_v31  ;;  %v1107_v47 = vadd.f32 1e-05, %v1095_v53  ;;  %v1085_v57 = vsub.f32 %v1061_v54, %v1073_v50  ;;  %v1062_v14 = vmul.f32 0.020833334, %v865_v55  ;;  %v868_v60 = vpop.f32.mrf.mxu0 }
 0x16d   : > { %v779_v16 = vpop.f32.mrf.mxu1 }
 0x16e   : > { %1469 = vrsqrt.f32 %v1107_v47  ;;  %v1097_v15 = vmax.f32 %v1085_v57, 0.0  ;;  %v1086_v35 = vsub.f32 %v1062_v14, %v1074_v56  ;;  %v869_v18 = vadd.f32 %v868_v60, %v779_v16  ;;  %v870_v63 = vpop.f32.mrf.mxu0 }
 0x16f   : > { %v781_v22 = vpop.f32.mrf.mxu1 }
 0x170   : > { %v1109_v24 = vadd.f32 1e-05, %v1097_v15  ;;  %v1098_v26 = vmax.f32 %v1086_v35, 0.0  ;;  %v1064_v28 = vmul.f32 0.020833334, %v869_v18  ;;  %v871_v30 = vadd.f32 %v870_v63, %v781_v22 }
 0x172   : > { %1471 = vrsqrt.f32 %v1109_v24  ;;  %v1110_v5 = vadd.f32 1e-05, %v1098_v26  ;;  %v1088_v9 = vsub.f32 %v1064_v28, %v1076_v61  ;;  %v1065_v13 = vmul.f32 0.020833334, %v871_v30 }
 0x173   : > { %v1292_v61 = vadd.f32 %v2742_v44, %v2738_v40 }
 0x174   : > { %v1464_v59 = vpop.eup %1463  ;;  %1473 = vrsqrt.f32 %v1110_v5  ;;  %v1100_v49 = vmax.f32 %v1088_v9, 0.0  ;;  %v1089_v42 = vsub.f32 %v1065_v13, %v1077_v32 }
 0x175   : > { %v1127_v45 = vmul.f32 %v1464_v59, %v2334_v21  ;;  %v680_v5 = vadd.f32 %v2736_v39, %v1292_v61 }
 0x176   : > { %v1466_v7 = vpop.eup %1465  ;;  %v1112_v19 = vadd.f32 1e-05, %v1100_v49  ;;  %v1101_v48 = vmax.f32 %v1089_v42, 0.0 }
 0x177   : > { %v1156_v0 = vmul.f32 %v1144_v3, %v1127_v45  ;;  %v1128_v50 = vmul.f32 %v1466_v7, %v2324_v23  ;;  %v1283_v23 = vadd.f32 %v2722_v33, %v2720_v17  ;;  %v1054_v7 = vmul.f32 0.020833334, %v680_v5 }
 0x178   : > { %1475 = vrsqrt.f32 %v1112_v19  ;;  %v1113_v21 = vadd.f32 1e-05, %v1101_v48 }
 0x179   : > { %v1468_v51 = vpop.eup %1467  ;;  %1168 = vst [vmem:[%s2762_s24] sm:$0xff] %v1156_v0  ;;  %v1157_v2 = vmul.f32 %v1148_v46, %v1128_v50  ;;  %v665_v57 = vadd.f32 %v1283_v23, %v2734_v38  ;;  %v1151_v23 = vsub.s32 2, %v2745_v11 }
 0x17a   : > { %v1130_v52 = vmul.f32 %v1468_v51, %v2362_v29  ;;  %1477 = vrsqrt.f32 %v1113_v21  ;;  %v1286_v29 = vadd.f32 %v2726_v34, %v2724_v27 }
 0x17b   : > { %v1470_v31 = vpop.eup %1469  ;;  %1169 = vst [vmem:[%s2762_s24 + $0x8] sm:$0xff] %v1157_v2  ;;  %v1045_v18 = vmul.f32 0.020833334, %v665_v57  ;;  %v1487_v57 = vld [vmem:[%s1922_s20 + $0x10] sm:$0xff] }
 0x17c   : > { %v1159_v53 = vmul.f32 %v1144_v3, %v1130_v52  ;;  %v1131_v54 = vmul.f32 %v1470_v31, %v2357_v43  ;;  %v670_v17 = vadd.f32 %v2730_v25, %v1286_v29  ;;  %v1078_v52 = vmul.f32 %v1054_v7, %v1054_v7 }
 0x17d   : > { %v1069_v28 = vmul.f32 %v1045_v18, %v1045_v18 }
 0x17e   : > { %1171 = vst [vmem:[%s2762_s24 + $0x18] sm:$0xff] %v1159_v53  ;;  %v1160_v55 = vmul.f32 %v1148_v46, %v1131_v54 }
 0x17f   : > { %v1472_v56 = vpop.eup %1471 }
 0x180   : > { %1172 = vst [vmem:[%s2762_s24 + $0x20] sm:$0xff] %v1160_v55  ;;  %v1133_v8 = vmul.f32 %v1472_v56, %v2388_v6  ;;  %v1289_v6 = vadd.f32 %v2732_v37, %v2728_v36  ;;  %v1048_v36 = vmul.f32 0.020833334, %v670_v17 }
 0x181   : > { %v1474_v47 = vpop.eup %1473 }
 0x182   : > { %v1162_v14 = vmul.f32 %v1144_v3, %v1133_v8  ;;  %v1134_v58 = vmul.f32 %v1474_v47, %v2383_v4  ;;  %v1345_v43 = vpop.f32.mrf.mxu0  ;;  %v675_v37 = vadd.f32 %v1289_v6, %v2740_v41  ;;  %v1152_v47 = vrot.slane %v2750_v20, %v1151_v23  ;;  %v1489_v6 = vld [vmem:[%s1922_s20 + $0x40] sm:$0xff]  ;;  %v1490_v20 = vld [vmem:[%s1922_s20 + $0x58] sm:$0xff] }
 0x184   : > { %1174 = vst [vmem:[%s2762_s24 + $0x30] sm:$0xff] %v1162_v14  ;;  %v1163_v16 = vmul.f32 %v1148_v46, %v1134_v58  ;;  %v1346_v60 = vpop.f32.mrf.mxu0  ;;  %v1449_v35 = vpop.f32.mrf.mxu1  ;;  %v1051_v13 = vmul.f32 0.020833334, %v675_v37 }
 0x185   : > { %v1476_v15 = vpop.eup %1475  ;;  %v1347_v33 = vadd.f32 %v1346_v60, %v1345_v43 }
 0x186   : > { %1175 = vst [vmem:[%s2762_s24 + $0x38] sm:$0xff] %v1163_v16  ;;  %v1136_v27 = vmul.f32 %v1476_v15, %v2414_v12  ;;  %v1348_v34 = vpop.f32.mrf.mxu0  ;;  %v1024_v4 = vpop.f32.mrf.mxu1  ;;  %v1075_v48 = vmul.f32 %v1051_v13, %v1051_v13  ;;  %v1488_v16 = vld [vmem:[%s1922_s20 + $0x28] sm:$0xff] }
 0x187   : > { %v1478_v38 = vpop.eup %1477  ;;  %v1025_v22 = vadd.f32 %v1347_v33, %v1024_v4 }
 0x188   : > { %v1165_v62 = vmul.f32 %v1144_v3, %v1136_v27  ;;  %v1137_v25 = vmul.f32 %v1478_v38, %v2409_v10  ;;  %v1349_v63 = vpop.f32.mrf.mxu0  ;;  %v1452_v26 = vpop.f32.mrf.mxu1  ;;  %v1072_v10 = vmul.f32 %v1048_v36, %v1048_v36 }
 0x189   : > { %v1350_v24 = vadd.f32 %v1349_v63, %v1348_v34  ;;  %v1057_v30 = vmul.f32 0.020833334, %v1025_v22 }
 0x18a   : > { %1177 = vst [vmem:[%s2762_s24 + $0x48] sm:$0xff] %v1165_v62  ;;  %v1166_v12 = vmul.f32 %v1148_v46, %v1137_v25  ;;  %v1351_v32 = vpop.f32.mrf.mxu0  ;;  %v1034_v9 = vpop.f32.mrf.mxu1 }
 0x18b   : > { %v1030_v1 = vadd.f32 %v1449_v35, %v1350_v24  ;;  %v1081_v40 = vsub.f32 %v1057_v30, %v1069_v28 }
 0x18c   : > { %1178 = vst [vmem:[%s2762_s24 + $0x50] sm:$0xff] %v1166_v12  ;;  %v1352_v44 = vpop.f32.mrf.mxu0 }
 0x18d   : > { %v1060_v3 = vmul.f32 0.020833334, %v1030_v1  ;;  %v1353_v59 = vadd.f32 %v1352_v44, %v1351_v32  ;;  %v1093_v49 = vmax.f32 %v1081_v40, 0.0 }
 0x18e   : > { %v1354_v41 = vpop.f32.mrf.mxu0 }
 0x18f   : > { %v1084_v42 = vsub.f32 %v1060_v3, %v1072_v10  ;;  %v1035_v45 = vadd.f32 %v1353_v59, %v1034_v9  ;;  %v1105_v19 = vadd.f32 1e-05, %v1093_v49 }
 0x190   : > { %v1355_v46 = vpop.f32.mrf.mxu0 }
 0x191   : > { %v1096_v0 = vmax.f32 %v1084_v42, 0.0  ;;  %v1063_v50 = vmul.f32 0.020833334, %v1035_v45  ;;  %v1356_v21 = vadd.f32 %v1355_v46, %v1354_v41  ;;  %1479 = vrsqrt.f32 %v1105_v19 }
 0x193   : > { %v1108_v39 = vadd.f32 1e-05, %v1096_v0  ;;  %v1087_v51 = vsub.f32 %v1063_v50, %v1075_v48  ;;  %v1040_v2 = vadd.f32 %v1452_v26, %v1356_v21 }
 0x195   : > { %1481 = vrsqrt.f32 %v1108_v39  ;;  %v1099_v31 = vmax.f32 %v1087_v51, 0.0  ;;  %v1066_v53 = vmul.f32 0.020833334, %v1040_v2 }
 0x197   : > { %v1111_v54 = vadd.f32 1e-05, %v1099_v31  ;;  %v1090_v55 = vsub.f32 %v1066_v53, %v1078_v52 }
 0x199   : > { %1483 = vrsqrt.f32 %v1111_v54  ;;  %v1102_v56 = vmax.f32 %v1090_v55, 0.0 }
 0x19b   : > { %v1114_v8 = vadd.f32 1e-05, %v1102_v56 }
 0x19d   : > { %1485 = vrsqrt.f32 %v1114_v8 }
 0x19e   : > { %v1480_v29 = vpop.eup %1479 }
 0x19f   : > { %v1129_v14 = vmul.f32 %v1487_v57, %v1480_v29 }
 0x1a1   : > { %v1158_v43 = vmul.f32 %v1152_v47, %v1129_v14 }
 0x1a2   : > { %v1482_v58 = vpop.eup %1481 }
 0x1a3   : > { %v1132_v60 = vmul.f32 %v1488_v16, %v1482_v58  ;;  %1170 = vst [vmem:[%s2762_s24 + $0x10] sm:$0xff] %v1158_v43 }
 0x1a5   : > { %v1161_v15 = vmul.f32 %v1152_v47, %v1132_v60 }
 0x1a6   : > { %v1484_v17 = vpop.eup %1483 }
 0x1a7   : > { %1173 = vst [vmem:[%s2762_s24 + $0x28] sm:$0xff] %v1161_v15  ;;  %v1135_v11 = vmul.f32 %v1489_v6, %v1484_v17 }
 0x1a9   : > { %v1164_v33 = vmul.f32 %v1152_v47, %v1135_v11 }
 0x1aa   : > { %v1486_v35 = vpop.eup %1485 }
 0x1ab   : > { %1176 = vst [vmem:[%s2762_s24 + $0x40] sm:$0xff] %v1164_v33  ;;  %v1138_v18 = vmul.f32 %v1490_v20, %v1486_v35 }
 0x1ad   : > { %v1167_v27 = vmul.f32 %v1152_v47, %v1138_v18 }
 0x1af   : > { %1179 = vst [vmem:[%s2762_s24 + $0x58] sm:$0xff] %v1167_v27 }
 0x1b0 PF: > { %s13_s12 = sadd.s32 1, %s1497_s12  }
 0x1b1   : > { %p10_p4 = scmp.ge.s32.totalorder %s13_s12, 4  }
 0x1b3   :  { %12 = sbr.rel (!%p10_p4) target bundleno = 1 (0x1), region = 62 }

</bundles_post_ra>
